<compile_context>
chip_gen: v7x
topology: tpu7x:2x2x1
jax: 0.10.0
libtpu: 0.0.40
codegen_flags: <defaults>
</compile_context>

<pallas_src>
import jax
import jax.numpy as jnp
from jax.experimental import pallas as pl
from jax.experimental.pallas import tpu as pltpu

_LANE = 128
_SUB = 8


def _round_up(x, m):
    return (x + m - 1) // m * m


def _cdiv(a, b):
    return -(-a // b)


def _vmem_capacity_bytes():
    """VMEM per TensorCore: 128 MiB on v4/v5/v6, 64 MiB on v7x."""
    try:
        return int(pltpu.get_tpu_info().vmem_capacity_bytes)
    except Exception:
        pass
    try:
        kind = jax.devices()[0].device_kind.lower()
    except Exception:
        kind = ""
    if "v7" in kind or "tpu7" in kind:
        return 64 << 20
    if any(tag in kind for tag in ("v4", "v5", "v6")):
        return 128 << 20
    return 64 << 20  # unknown generation: assume the smallest


# ----------------------------------------------------------------------------
# Fused kernel: pool + gate + rescale from one resident (C, H, W) block.
# ----------------------------------------------------------------------------
def _make_fused_kernel(inv_s):
    def kernel(x_ref, w1_ref, b1_ref, w2_ref, b2_ref, o_ref):
        x = x_ref[...]                                   # (C, H, W), activation dtype
        # Global average pool with f32 accumulation.  Two single-axis lane
        # reductions (W then H) keep everything in natural layouts.
        xf = x.astype(jnp.float32)
        pooled = jnp.sum(jnp.sum(xf, axis=2), axis=1, keepdims=True) * inv_s   # (C, 1)
        # conv1 1x1 (C -> Cmid) + bias + ReLU, conv2 (Cmid -> C) + bias + sigmoid.
        # Tiny MXU dots (the MXU is otherwise idle); f32 accumulation is exact.
        y1 = jnp.dot(w1_ref[...], pooled, preferred_element_type=jnp.float32)
        y1 = jnp.maximum(y1 + b1_ref[...], 0.0)          # (Cmid, 1)
        y2 = jnp.dot(w2_ref[...], y1, preferred_element_type=jnp.float32)
        gate = jax.nn.sigmoid(y2 + b2_ref[...])          # (C, 1), f32
        # Channel rescale in the activation dtype; one full-width store.
        o_ref[...] = x * gate.astype(x.dtype)[:, :, None]
    return kernel


# ----------------------------------------------------------------------------
# Split path: scale-only kernel (gate precomputed outside, size N*C only).
# ----------------------------------------------------------------------------
def _scale_kernel(x_ref, g_ref, o_ref):
    # x_ref: (C, th, W) activation dtype, g_ref: (C, 1, 1) f32 gate.
    x = x_ref[...]
    o_ref[...] = x * g_ref[...].astype(x.dtype)


def _gate_xla(x_nchw, w1, b1, w2, b2):
    # Gate is only N*C numbers -> plain XLA is the right tool.
    pooled = jnp.mean(x_nchw.astype(jnp.float32), axis=(2, 3))     # (N, C)
    y1 = jnp.maximum(pooled @ w1.T + b1, 0.0)                      # (N, Cmid)
    return jax.nn.sigmoid(y1 @ w2.T + b2)                          # (N, C) f32


# ----------------------------------------------------------------------------
# Wrapper
# ----------------------------------------------------------------------------
def ca_layer(x_nchw, w1, b1, w2, b2, mode="auto"):
    """Channel attention: x * sigmoid(conv2(relu(conv1(avgpool(x))))).

    x_nchw: (N, C, H, W).  w1: (Cmid, C).  b1: (1, Cmid).  w2: (C, Cmid).
    b2: (1, C).  mode: "auto" | "fused" | "split".
    """
    if mode not in ("auto", "fused", "split"):
        raise ValueError(f"bad mode: {mode}")

    N, C, H, W = x_nchw.shape
    S = H * W
    itemsize = jnp.dtype(x_nchw.dtype).itemsize
    vmem_cap = _vmem_capacity_bytes()

    blk = C * S * itemsize                         # one (C, H, W) block
    f32_tmp = 0 if itemsize >= 4 else C * S * 4    # pooling cast temp (bf16 only)
    weight_bytes = 4 * (w1.size + b1.size + w2.size + b2.size)
    # in + out blocks, each double-buffered by the BlockSpec pipeline, + temp.
    fused_required = 4 * blk + f32_tmp + weight_bytes

    if mode == "auto":
        mode = "fused" if fused_required <= int(vmem_cap * 0.65) else "split"
    elif mode == "fused" and fused_required > int(vmem_cap * 0.85):
        mode = "split"   # graceful demotion instead of a VMEM compile failure

    if mode == "fused":
        vlimit = min(int(vmem_cap * 0.9),
                     max(32 << 20, int(fused_required * 1.35) + (2 << 20)))
        out = pl.pallas_call(
            _make_fused_kernel(1.0 / float(S)),
            out_shape=jax.ShapeDtypeStruct((N, C, H, W), x_nchw.dtype),
            grid_spec=pltpu.PrefetchScalarGridSpec(
                num_scalar_prefetch=0,
                grid=(N,),                        # one example per grid step
                in_specs=[
                    pl.BlockSpec((None, C, H, W), lambda n: (n, 0, 0, 0)),
                    pl.BlockSpec(w1.shape, lambda n: (0, 0)),
                    pl.BlockSpec((w1.shape[0], 1), lambda n: (0, 0)),
                    pl.BlockSpec(w2.shape, lambda n: (0, 0)),
                    pl.BlockSpec((C, 1), lambda n: (0, 0)),
                ],
                out_specs=pl.BlockSpec((None, C, H, W), lambda n: (n, 0, 0, 0)),
            ),
            compiler_params=pltpu.CompilerParams(
                dimension_semantics=("parallel",),
                vmem_limit_bytes=vlimit),
            input_output_aliases={0: 0},          # in-place channel rescale of x
        )(x_nchw, w1, jnp.reshape(b1, (-1, 1)), w2, jnp.reshape(b2, (-1, 1)))
        return out

    # SPLIT: gate in plain XLA, then a tiled scale-only kernel over (N, H-tiles).
    gate = _gate_xla(x_nchw, w1, b1, w2, b2).reshape(N, C, 1, 1)

    # ~2-8 MiB blocks: large enough that the ~0.35 us per-step overhead and DMA
    # issue latency are negligible, small enough for v7x's 64 MiB VMEM.
    row_bytes = max(C * W * itemsize, 1)
    target_blk = min(8 << 20, vmem_cap // 16)
    th = max(_SUB, min(H, (target_blk // row_bytes) // _SUB * _SUB))
    # Keep >= ~8 total grid steps so both v7x TensorCores get pipeline depth.
    min_steps = 8
    if N * _cdiv(H, th) < min_steps and H > _SUB:
        th = max(_SUB, _round_up(_cdiv(H, _cdiv(min_steps, N)), _SUB))
    th = min(th, H)
    n_tiles = _cdiv(H, th)
    # TODO(synk): if a single (C, 8, W) slab ever overflows VMEM (very wide,
    # very deep feature maps) the W axis would also need tiling; not needed
    # for this module's shapes.

    blk_s = C * th * W * itemsize
    vlimit = min(int(vmem_cap * 0.9),
                 max(32 << 20, int(4 * blk_s * 1.35) + N * C * 4 + (2 << 20)))
    out = pl.pallas_call(
        _scale_kernel,
        out_shape=jax.ShapeDtypeStruct((N, C, H, W), x_nchw.dtype),
        grid_spec=pltpu.PrefetchScalarGridSpec(
            num_scalar_prefetch=0,
            grid=(N, n_tiles),
            in_specs=[
                pl.BlockSpec((None, C, th, W), lambda n, t: (n, 0, t, 0)),
                pl.BlockSpec((None, C, 1, 1), lambda n, t: (n, 0, 0, 0)),
            ],
            out_specs=pl.BlockSpec((None, C, th, W), lambda n, t: (n, 0, t, 0)),
        ),
        compiler_params=pltpu.CompilerParams(
            dimension_semantics=("parallel", "parallel"),
            vmem_limit_bytes=vlimit),
        input_output_aliases={0: 0},
    )(x_nchw, gate)
    return out


def ca_layer_ref(x, w1, b1, w2, b2):
    """Pure-JAX reference of the PyTorch forward (same weight layout)."""
    pooled = jnp.mean(x.astype(jnp.float32), axis=(2, 3))          # (N, C)
    y1 = jnp.maximum(pooled @ w1.T + b1, 0.0)                      # (N, Cmid)
    y2 = jax.nn.sigmoid(y1 @ w2.T + b2)                            # (N, C)
    return (x.astype(jnp.float32) * y2[:, :, None, None]).astype(x.dtype)


if __name__ == "__main__":
    # Small shapes consistent with CALayer(channel=32, reduction=16).
    N, C, H, W = 2, 32, 16, 16
    reduction = 16
    Cmid = C // reduction

    key = jax.random.PRNGKey(0)
    kx, kw1, kb1, kw2, kb2 = jax.random.split(key, 5)

    x = jax.random.normal(kx, (N, C, H, W), dtype=jnp.float32)
    w1 = jax.random.normal(kw1, (Cmid, C), dtype=jnp.float32) * 0.1   # conv1.weight[:,:,0,0]
    b1 = jax.random.normal(kb1, (1, Cmid), dtype=jnp.float32) * 0.1   # conv1.bias
    w2 = jax.random.normal(kw2, (C, Cmid), dtype=jnp.float32) * 0.1   # conv2.weight[:,:,0,0]
    b2 = jax.random.normal(kb2, (1, C), dtype=jnp.float32) * 0.1      # conv2.bias

    ref = ca_layer_ref(x, w1, b1, w2, b2)

    # 1) auto path: fused, grid=(N,), no padding / reshaping of x.
    out = jax.block_until_ready(ca_layer(x, w1, b1, w2, b2))
    assert out.shape == (N, C, H, W)
    assert jnp.allclose(out, ref, atol=1e-5, rtol=1e-5), "fused mismatch"

    # 2) split path (large-feature-map fallback), forced on the small input.
    out_s = jax.block_until_ready(ca_layer(x, w1, b1, w2, b2, mode="split"))
    assert jnp.allclose(out_s, ref, atol=1e-5, rtol=1e-5), "split mismatch"

    # 3) non-8 / non-128 spatial dims exercise full-extent blocks + masked edges.
    x2 = jax.random.normal(kx, (N, C, 10, 10), dtype=jnp.float32)
    ref2 = ca_layer_ref(x2, w1, b1, w2, b2)
    out2 = jax.block_until_ready(ca_layer(x2, w1, b1, w2, b2))
    assert jnp.allclose(out2, ref2, atol=1e-5, rtol=1e-5), "odd-shape fused mismatch"
    out2s = jax.block_until_ready(ca_layer(x2, w1, b1, w2, b2, mode="split"))
    assert jnp.allclose(out2s, ref2, atol=1e-5, rtol=1e-5), "odd-shape split mismatch"

    # 4) bf16 activations (halved HBM traffic); gate math stays in f32.
    xb = x.astype(jnp.bfloat16)
    refb = ca_layer_ref(xb, w1, b1, w2, b2).astype(jnp.float32)
    outb = jax.block_until_ready(ca_layer(xb, w1, b1, w2, b2)).astype(jnp.float32)
    assert jnp.allclose(outb, refb, atol=5e-2, rtol=5e-2), "bf16 mismatch"

    print("KERNEL_OK")
</pallas_src>

<mosaic_0001>
module attributes {stable_mosaic.version = 11 : i64} {
  func.func @kernel(%arg0: i32, %arg1: memref<1x32x16x16xf32, #tpu.memory_space<vmem>>, %arg2: memref<2x32xf32, #tpu.memory_space<vmem>>, %arg3: memref<2x1xf32, #tpu.memory_space<vmem>>, %arg4: memref<32x2xf32, #tpu.memory_space<vmem>>, %arg5: memref<32x1xf32, #tpu.memory_space<vmem>>, %arg6: memref<1x32x16x16xf32, #tpu.memory_space<vmem>>) attributes {dimension_semantics = [#tpu.dimension_semantics<parallel>], iteration_bounds = array<i64: 2>, scalar_prefetch = 0 : i64, scratch_operands = 0 : i64, tpu.core_type = #tpu.core_type<tc>, window_params = [{transform_indices = @transform_0, window_bounds = array<i64: 1, 32, 16, 16>}, {pipeline_mode = #tpu.pipeline_mode<synchronous>, transform_indices = @transform_1, window_bounds = array<i64: 2, 32>}, {pipeline_mode = #tpu.pipeline_mode<synchronous>, transform_indices = @transform_2, window_bounds = array<i64: 2, 1>}, {pipeline_mode = #tpu.pipeline_mode<synchronous>, transform_indices = @transform_3, window_bounds = array<i64: 32, 2>}, {pipeline_mode = #tpu.pipeline_mode<synchronous>, transform_indices = @transform_4, window_bounds = array<i64: 32, 1>}, {transform_indices = @transform_5, window_bounds = array<i64: 1, 32, 16, 16>}]} {
    %c0 = arith.constant 0 : index
    %c0_0 = arith.constant 0 : index
    %c0_1 = arith.constant 0 : index
    %c0_2 = arith.constant 0 : index
    %0 = vector.load %arg1[%c0, %c0_0, %c0_1, %c0_2] : memref<1x32x16x16xf32, #tpu.memory_space<vmem>>, vector<1x32x16x16xf32>
    %1 = vector.shape_cast %0 : vector<1x32x16x16xf32> to vector<32x16x16xf32>
    %cst = arith.constant dense<0.000000e+00> : vector<32x16xf32>
    %2 = vector.multi_reduction <add>, %1, %cst [2] : vector<32x16x16xf32> to vector<32x16xf32>
    %cst_3 = arith.constant dense<0.000000e+00> : vector<32xf32>
    %3 = vector.multi_reduction <add>, %2, %cst_3 [1] : vector<32x16xf32> to vector<32xf32>
    %4 = vector.shape_cast %3 : vector<32xf32> to vector<32x1xf32>
    %cst_4 = arith.constant 3.906250e-03 : f32
    %5 = vector.broadcast %cst_4 : f32 to vector<32x1xf32>
    %6 = arith.mulf %4, %5 : vector<32x1xf32>
    %c0_5 = arith.constant 0 : index
    %c0_6 = arith.constant 0 : index
    %7 = vector.load %arg2[%c0_5, %c0_6] : memref<2x32xf32, #tpu.memory_space<vmem>>, vector<2x32xf32>
    %cst_7 = arith.constant dense<0.000000e+00> : vector<2x1xf32>
    %8 = tpu.matmul %7, %6, %cst_7 {dimension_numbers = #tpu.dot_dimension_numbers<[1], [0], [0], [1], [0, 0, 1, 1], [], []>} : vector<2x32xf32>, vector<32x1xf32>, vector<2x1xf32> -> vector<2x1xf32>
    %c0_8 = arith.constant 0 : index
    %c0_9 = arith.constant 0 : index
    %9 = vector.load %arg3[%c0_8, %c0_9] : memref<2x1xf32, #tpu.memory_space<vmem>>, vector<2x1xf32>
    %10 = arith.addf %8, %9 : vector<2x1xf32>
    %cst_10 = arith.constant 0.000000e+00 : f32
    %11 = vector.broadcast %cst_10 : f32 to vector<2x1xf32>
    %12 = arith.maximumf %10, %11 : vector<2x1xf32>
    %c0_11 = arith.constant 0 : index
    %c0_12 = arith.constant 0 : index
    %13 = vector.load %arg4[%c0_11, %c0_12] : memref<32x2xf32, #tpu.memory_space<vmem>>, vector<32x2xf32>
    %cst_13 = arith.constant dense<0.000000e+00> : vector<32x1xf32>
    %14 = tpu.matmul %13, %12, %cst_13 {dimension_numbers = #tpu.dot_dimension_numbers<[1], [0], [0], [1], [0, 0, 1, 1], [], []>} : vector<32x2xf32>, vector<2x1xf32>, vector<32x1xf32> -> vector<32x1xf32>
    %c0_14 = arith.constant 0 : index
    %c0_15 = arith.constant 0 : index
    %15 = vector.load %arg5[%c0_14, %c0_15] : memref<32x1xf32, #tpu.memory_space<vmem>>, vector<32x1xf32>
    %16 = arith.addf %14, %15 : vector<32x1xf32>
    %17 = arith.negf %16 : vector<32x1xf32>
    %18 = math.exp %17 : vector<32x1xf32>
    %cst_16 = arith.constant 1.000000e+00 : f32
    %19 = vector.broadcast %cst_16 : f32 to vector<32x1xf32>
    %20 = arith.addf %19, %18 : vector<32x1xf32>
    %21 = arith.divf %19, %20 : vector<32x1xf32>
    %22 = vector.shape_cast %21 : vector<32x1xf32> to vector<32x1x1xf32>
    %23 = vector.broadcast %22 : vector<32x1x1xf32> to vector<32x16x16xf32>
    %24 = arith.mulf %1, %23 : vector<32x16x16xf32>
    %c0_17 = arith.constant 0 : index
    %c0_18 = arith.constant 0 : index
    %c0_19 = arith.constant 0 : index
    %c0_20 = arith.constant 0 : index
    %25 = vector.load %arg6[%c0_17, %c0_18, %c0_19, %c0_20] : memref<1x32x16x16xf32, #tpu.memory_space<vmem>>, vector<1x32x16x16xf32>
    %26 = vector.shape_cast %25 : vector<1x32x16x16xf32> to vector<32x16x16xf32>
    %27 = vector.shape_cast %24 : vector<32x16x16xf32> to vector<1x32x16x16xf32>
    tpu.vector_store %arg6[%c0_17, %c0_18, %c0_19, %c0_20], %27 {strides = array<i32>} : memref<1x32x16x16xf32, #tpu.memory_space<vmem>>, vector<1x32x16x16xf32>,
    return
  }
  func.func @transform_0(%arg0: i32) -> (i32, i32, i32, i32) {
    %c0_i32 = arith.constant 0 : i32
    %c0_i32_0 = arith.constant 0 : i32
    %c0_i32_1 = arith.constant 0 : i32
    %c0_i32_2 = arith.constant 0 : i32
    return %arg0, %c0_i32, %c0_i32_0, %c0_i32_1 : i32, i32, i32, i32
  }
  func.func @transform_1(%arg0: i32) -> (i32, i32) {
    %c0_i32 = arith.constant 0 : i32
    %c0_i32_0 = arith.constant 0 : i32
    %c0_i32_1 = arith.constant 0 : i32
    return %c0_i32, %c0_i32_0 : i32, i32
  }
  func.func @transform_2(%arg0: i32) -> (i32, i32) {
    %c0_i32 = arith.constant 0 : i32
    %c0_i32_0 = arith.constant 0 : i32
    %c0_i32_1 = arith.constant 0 : i32
    return %c0_i32, %c0_i32_0 : i32, i32
  }
  func.func @transform_3(%arg0: i32) -> (i32, i32) {
    %c0_i32 = arith.constant 0 : i32
    %c0_i32_0 = arith.constant 0 : i32
    %c0_i32_1 = arith.constant 0 : i32
    return %c0_i32, %c0_i32_0 : i32, i32
  }
  func.func @transform_4(%arg0: i32) -> (i32, i32) {
    %c0_i32 = arith.constant 0 : i32
    %c0_i32_0 = arith.constant 0 : i32
    %c0_i32_1 = arith.constant 0 : i32
    return %c0_i32, %c0_i32_0 : i32, i32
  }
  func.func @transform_5(%arg0: i32) -> (i32, i32, i32, i32) {
    %c0_i32 = arith.constant 0 : i32
    %c0_i32_0 = arith.constant 0 : i32
    %c0_i32_1 = arith.constant 0 : i32
    %c0_i32_2 = arith.constant 0 : i32
    return %arg0, %c0_i32, %c0_i32_0, %c0_i32_1 : i32, i32, i32, i32
  }
}

</mosaic_0001>

<bundles_post_ra>
// kernel: tpu_custom_call.1
= control target key start
LH: loop header
LB: loop body
LE: loop exit
PB: predicated region body
PF: predicated region fallthrough
CT: control target
= control target key end

     0   :  { %s1879_s18 = smov 0   ;;  %s2716_s0 = inlined_call_operand.vmem [shape: f32[2,32,16,16], index: 0, kind: input, shape index: {}, may-alias: {0,5}]   ;;  %s2717_s1 = inlined_call_operand.vmem [shape: f32[2,32], index: 1, kind: input, shape index: {}]   ;;  %s2718_s2 = inlined_call_operand.vmem [shape: f32[2,1], index: 2, kind: input, shape index: {}]   ;;  %s2719_s3 = inlined_call_operand.vmem [shape: f32[32,2], index: 3, kind: input, shape index: {}]   ;;  %s2720_s4 = inlined_call_operand.vmem [shape: f32[32,1], index: 4, kind: input, shape index: {}]   ;;  %s2721_s5 = inlined_call_operand.vmem [shape: f32[2,32,16,16], index: 5, kind: output, shape index: {}, may-alias: {0,5}]  }
   0x1 LB: > { %s1743_s19 = sadd.s32 4294967295, %s1842_s18   ;;  %p1747_p0 = scmp.ge.s32.totalorder %s1842_s18, 1  ;;  %s1842_s18 = sphi %s1879_s18, %s15_s18  }
   0x2   : > { %p187_p1 = scmp.lt.s32.totalorder %s1842_s18, 3 }
   0x4   : > { %p188_p2 = pnand %p1747_p0, %p187_p1 }
   0x6   : > { %191 = sbr.rel (%p188_p2) target bundleno = 1107 (0x453), region = 40 }
   0xd   : > { %p215_p3 = scmp.lt.s32.totalorder %s1743_s19, 1  ;;  %vm289_vm0 = vcmask 130048   ;;  %vm557_vm1 = vcmask 130112   ;;  %vm838_vm2 = vcmask 1041409   ;;  %vm840_vm3 = vcmask 1042434  }
   0xe   : > { %vm842_vm4 = vcmask 1043459   ;;  %vm844_vm5 = vcmask 1044484   ;;  %vm846_vm6 = vcmask 1045509   ;;  %vm848_vm7 = vcmask 1046534  }
   0xf   : > { %s2846_s19 = smov (!%p215_p3, %s1743_s19), 1  ;;  %vm850_vm8 = vcmask 1047559   ;;  %vm1845_vm9 = vmmov 0   ;;  %vm895_vm10 = vcmask 261120   ;;  %vm978_vm11 = vcmask 15360  }
  0x10   : > { %s1764_s20 = sshll.u32 %s2846_s19, 9  ;;  %vm991_vm12 = vcmask 1041408  }
  0x11   : > { %s1895_s23 = scalar_lea.vmem %s2716_s0, %s1764_s20  ;;  %s2519_s25 = scalar_lea.vmem %s2721_s5, %s1764_s20 }
  0x12   : > { %v1898_v0 = vld [vmem:[%s1895_s23 + $0x10] sm:$0xff]  ;;  %v225_v1 = vld [vmem:[%s1895_s23] sm:$0xff]  ;;  %v1902_v2 = vld [vmem:[%s1895_s23 + $0x18] sm:$0xff] }
  0x13   : > { %v296_v3 = vsel %vm289_vm0, %v1898_v0, 0.0  ;;  %v290_v4 = vsel %vm289_vm0, %v225_v1, 0.0  ;;  %v226_v5 = vld [vmem:[%s1895_s23 + $0x8] sm:$0xff]  ;;  %v299_v6 = vsel %vm289_vm0, %v1902_v2, 0.0  ;;  %v241_v9 = vld [vmem:[%s1895_s23 + $0x80] sm:$0xff]  ;;  %v1916_v12 = vld [vmem:[%s1895_s23 + $0x98] sm:$0xff] }
  0x14   : > { %297 = vadd.xlane.f32.xlu1 %v296_v3  ;;  %291 = vadd.xlane.f32.xlu0 %v290_v4  ;;  %v293_v7 = vsel %vm289_vm0, %v226_v5, 0.0  ;;  %v242_v8 = vld [vmem:[%s1895_s23 + $0x88] sm:$0xff]  ;;  %v338_v11 = vsel %vm289_vm0, %v241_v9, 0.0  ;;  %v1919_v13 = vld [vmem:[%s1895_s23 + $0x90] sm:$0xff]  ;;  %v347_v14 = vsel %vm289_vm0, %v1916_v12, 0.0  ;;  %v1929_v17 = vld [vmem:[%s1895_s23 + $0x20] sm:$0xff] }
  0x15   : > { %v341_v10 = vsel %vm289_vm0, %v242_v8, 0.0  ;;  %v344_v15 = vsel %vm289_vm0, %v1919_v13, 0.0  ;;  %v1926_v16 = vld [vmem:[%s1895_s23 + $0x28] sm:$0xff]  ;;  %v302_v19 = vsel %vm289_vm0, %v1929_v17, 0.0  ;;  %v1939_v21 = vld [vmem:[%s1895_s23 + $0xa0] sm:$0xff]  ;;  %v1946_v24 = vld [vmem:[%s1895_s23 + $0x38] sm:$0xff] }
  0x16   : > { %v305_v18 = vsel %vm289_vm0, %v1926_v16, 0.0  ;;  %v1936_v20 = vld [vmem:[%s1895_s23 + $0xa8] sm:$0xff]  ;;  %v350_v23 = vsel %vm289_vm0, %v1939_v21, 0.0  ;;  %2763 = vst [vmem:[#allocation2_spill] sm:$0xff] %v1946_v24  ;;  %v1949_v25 = vld [vmem:[%s1895_s23 + $0x30] sm:$0xff]  ;;  %v311_v26 = vsel %vm289_vm0, %v1946_v24, 0.0 }
  0x17   : > { %v353_v22 = vsel %vm289_vm0, %v1936_v20, 0.0  ;;  %2764 = vst [vmem:[#allocation3_spill] sm:$0xff] %v1949_v25  ;;  %v308_v27 = vsel %vm289_vm0, %v1949_v25, 0.0  ;;  %v1956_v28 = vld [vmem:[%s1895_s23 + $0xb8] sm:$0xff]  ;;  %v1959_v29 = vld [vmem:[%s1895_s23 + $0xb0] sm:$0xff]  ;;  %v1966_v32 = vld [vmem:[%s1895_s23 + $0x48] sm:$0xff] }
  0x18   : > { %300 = vadd.xlane.f32.xlu1 %v299_v6  ;;  %294 = vadd.xlane.f32.xlu0 %v293_v7  ;;  %v359_v30 = vsel %vm289_vm0, %v1956_v28, 0.0  ;;  %v356_v31 = vsel %vm289_vm0, %v1959_v29, 0.0  ;;  %v1969_v33 = vld [vmem:[%s1895_s23 + $0x40] sm:$0xff]  ;;  %v317_v34 = vsel %vm289_vm0, %v1966_v32, 0.0  ;;  %v1976_v36 = vld [vmem:[%s1895_s23 + $0xc8] sm:$0xff]  ;;  %v1986_v40 = vld [vmem:[%s1895_s23 + $0x58] sm:$0xff] }
  0x19   : > { %v314_v35 = vsel %vm289_vm0, %v1969_v33, 0.0  ;;  %v1979_v37 = vld [vmem:[%s1895_s23 + $0xc0] sm:$0xff]  ;;  %v365_v38 = vsel %vm289_vm0, %v1976_v36, 0.0  ;;  %2765 = vst [vmem:[#allocation4_spill] sm:$0xff] %v1986_v40  ;;  %v1989_v41 = vld [vmem:[%s1895_s23 + $0x50] sm:$0xff]  ;;  %v323_v42 = vsel %vm289_vm0, %v1986_v40, 0.0 }
  0x1a   : > { %v362_v39 = vsel %vm289_vm0, %v1979_v37, 0.0  ;;  %2766 = vst [vmem:[#allocation5_spill] sm:$0xff] %v1989_v41  ;;  %v320_v43 = vsel %vm289_vm0, %v1989_v41, 0.0  ;;  %v1996_v44 = vld [vmem:[%s1895_s23 + $0xd8] sm:$0xff]  ;;  %v1999_v45 = vld [vmem:[%s1895_s23 + $0xd0] sm:$0xff]  ;;  %v2006_v48 = vld [vmem:[%s1895_s23 + $0x108] sm:$0xff] }
  0x1b   : > { %v371_v46 = vsel %vm289_vm0, %v1996_v44, 0.0  ;;  %v368_v47 = vsel %vm289_vm0, %v1999_v45, 0.0  ;;  %2767 = vst [vmem:[#allocation6_spill] sm:$0xff] %v2006_v48  ;;  %v2009_v49 = vld [vmem:[%s1895_s23 + $0x100] sm:$0xff]  ;;  %v389_v50 = vsel %vm289_vm0, %v2006_v48, 0.0  ;;  %v2016_v52 = vld [vmem:[%s1895_s23 + $0x118] sm:$0xff] }
  0x1c   : > { %342 = vadd.xlane.f32.xlu1 %v341_v10  ;;  %339 = vadd.xlane.f32.xlu0 %v338_v11  ;;  %2768 = vst [vmem:[#allocation7_spill] sm:$0xff] %v2009_v49  ;;  %v386_v51 = vsel %vm289_vm0, %v2009_v49, 0.0  ;;  %2769 = vst [vmem:[#allocation8_spill] sm:$0xff] %v2016_v52  ;;  %v2019_v53 = vld [vmem:[%s1895_s23 + $0x110] sm:$0xff]  ;;  %v395_v54 = vsel %vm289_vm0, %v2016_v52, 0.0  ;;  %v2026_v56 = vld [vmem:[%s1895_s23 + $0x188] sm:$0xff] }
  0x1d   : > { %2770 = vst [vmem:[#allocation9_spill] sm:$0xff] %v2019_v53  ;;  %v392_v55 = vsel %vm289_vm0, %v2019_v53, 0.0  ;;  %2771 = vst [vmem:[#allocation10_spill] sm:$0xff] %v2026_v56  ;;  %v2029_v57 = vld [vmem:[%s1895_s23 + $0x180] sm:$0xff]  ;;  %v437_v58 = vsel %vm289_vm0, %v2026_v56, 0.0  ;;  %v2036_v60 = vld [vmem:[%s1895_s23 + $0x198] sm:$0xff] }
  0x1e   : > { %2772 = vst [vmem:[#allocation11_spill] sm:$0xff] %v2029_v57  ;;  %v434_v59 = vsel %vm289_vm0, %v2029_v57, 0.0  ;;  %2773 = vst [vmem:[#allocation12_spill] sm:$0xff] %v2036_v60  ;;  %v2039_v61 = vld [vmem:[%s1895_s23 + $0x190] sm:$0xff]  ;;  %v443_v62 = vsel %vm289_vm0, %v2036_v60, 0.0  ;;  %v2046_v1 = vld [vmem:[%s1895_s23 + $0x68] sm:$0xff] }
  0x1f   : > { %v440_v63 = vsel %vm289_vm0, %v2039_v61, 0.0  ;;  %2774 = vst [vmem:[#allocation13_spill] sm:$0xff] %v2046_v1  ;;  %v2049_v3 = vld [vmem:[%s1895_s23 + $0x60] sm:$0xff]  ;;  %v329_v4 = vsel %vm289_vm0, %v2046_v1, 0.0  ;;  %v2056_v6 = vld [vmem:[%s1895_s23 + $0xe8] sm:$0xff] }
  0x20   : > { %348 = vadd.xlane.f32.xlu1 %v347_v14  ;;  %345 = vadd.xlane.f32.xlu0 %v344_v15  ;;  %2775 = vst [vmem:[#allocation14_spill] sm:$0xff] %v2049_v3  ;;  %v326_v5 = vsel %vm289_vm0, %v2049_v3, 0.0  ;;  %2776 = vst [vmem:[#allocation15_spill] sm:$0xff] %v2056_v6  ;;  %v2059_v7 = vld [vmem:[%s1895_s23 + $0xe0] sm:$0xff]  ;;  %v377_v8 = vsel %vm289_vm0, %v2056_v6, 0.0  ;;  %v2066_v10 = vld [vmem:[%s1895_s23 + $0x128] sm:$0xff] }
  0x21   : > { %2777 = vst [vmem:[#allocation16_spill] sm:$0xff] %v2059_v7  ;;  %v374_v9 = vsel %vm289_vm0, %v2059_v7, 0.0  ;;  %2778 = vst [vmem:[#allocation17_spill] sm:$0xff] %v2066_v10  ;;  %v2069_v11 = vld [vmem:[%s1895_s23 + $0x120] sm:$0xff]  ;;  %v401_v14 = vsel %vm289_vm0, %v2066_v10, 0.0 }
  0x22   : > { %2779 = vst [vmem:[#allocation18_spill] sm:$0xff] %v2069_v11  ;;  %v398_v15 = vsel %vm289_vm0, %v2069_v11, 0.0 }
  0x24   : > { %306 = vadd.xlane.f32.xlu1 %v305_v18  ;;  %303 = vadd.xlane.f32.xlu0 %v302_v19  ;;  %v2076_v18 = vld [vmem:[%s1895_s23 + $0x1a8] sm:$0xff]  ;;  %v2079_v19 = vld [vmem:[%s1895_s23 + $0x1a0] sm:$0xff] }
  0x25   : > { %2780 = vst [vmem:[#allocation19_spill] sm:$0xff] %v2076_v18  ;;  %2781 = vst [vmem:[#allocation20_spill] sm:$0xff] %v2079_v19 }
  0x28   : > { %354 = vadd.xlane.f32.xlu1 %v353_v22  ;;  %351 = vadd.xlane.f32.xlu0 %v350_v23  ;;  %v449_v22 = vsel %vm289_vm0, %v2076_v18, 0.0  ;;  %v446_v23 = vsel %vm289_vm0, %v2079_v19, 0.0 }
  0x2c   : > { %312 = vadd.xlane.f32.xlu1 %v311_v26  ;;  %309 = vadd.xlane.f32.xlu0 %v308_v27  ;;  %v2086_v26 = vld [vmem:[%s1895_s23 + $0x78] sm:$0xff]  ;;  %v2089_v27 = vld [vmem:[%s1895_s23 + $0x70] sm:$0xff] }
  0x2d   : > { %2782 = vst [vmem:[#allocation21_spill] sm:$0xff] %v2086_v26  ;;  %2783 = vst [vmem:[#allocation22_spill] sm:$0xff] %v2089_v27 }
  0x30   : > { %360 = vadd.xlane.f32.xlu1 %v359_v30  ;;  %357 = vadd.xlane.f32.xlu0 %v356_v31  ;;  %v335_v30 = vsel %vm289_vm0, %v2086_v26, 0.0  ;;  %v332_v31 = vsel %vm289_vm0, %v2089_v27, 0.0 }
  0x34   : > { %318 = vadd.xlane.f32.xlu1 %v317_v34  ;;  %315 = vadd.xlane.f32.xlu0 %v314_v35  ;;  %v2096_v34 = vld [vmem:[%s1895_s23 + $0xf8] sm:$0xff]  ;;  %v2099_v35 = vld [vmem:[%s1895_s23 + $0xf0] sm:$0xff] }
  0x38   : > { %366 = vadd.xlane.f32.xlu1 %v365_v38  ;;  %363 = vadd.xlane.f32.xlu0 %v362_v39  ;;  %v383_v38 = vsel %vm289_vm0, %v2096_v34, 0.0  ;;  %v380_v39 = vsel %vm289_vm0, %v2099_v35, 0.0 }
  0x3c   : > { %324 = vadd.xlane.f32.xlu1 %v323_v42  ;;  %321 = vadd.xlane.f32.xlu0 %v320_v43  ;;  %v2106_v42 = vld [vmem:[%s1895_s23 + $0x138] sm:$0xff]  ;;  %v2109_v43 = vld [vmem:[%s1895_s23 + $0x130] sm:$0xff] }
  0x3d   : > { %2784 = vst [vmem:[#allocation23_spill] sm:$0xff] %v2106_v42  ;;  %2785 = vst [vmem:[#allocation24_spill] sm:$0xff] %v2109_v43 }
  0x40   : > { %372 = vadd.xlane.f32.xlu1 %v371_v46  ;;  %369 = vadd.xlane.f32.xlu0 %v368_v47  ;;  %v407_v46 = vsel %vm289_vm0, %v2106_v42, 0.0  ;;  %v404_v47 = vsel %vm289_vm0, %v2109_v43, 0.0 }
  0x44   : > { %390 = vadd.xlane.f32.xlu1 %v389_v50  ;;  %387 = vadd.xlane.f32.xlu0 %v386_v51  ;;  %v2116_v50 = vld [vmem:[%s1895_s23 + $0x1b8] sm:$0xff]  ;;  %v2119_v51 = vld [vmem:[%s1895_s23 + $0x1b0] sm:$0xff] }
  0x45   : > { %2786 = vst [vmem:[#allocation25_spill] sm:$0xff] %v2116_v50  ;;  %2787 = vst [vmem:[#allocation26_spill] sm:$0xff] %v2119_v51 }
  0x48   : > { %396 = vadd.xlane.f32.xlu1 %v395_v54  ;;  %393 = vadd.xlane.f32.xlu0 %v392_v55  ;;  %v455_v54 = vsel %vm289_vm0, %v2116_v50, 0.0  ;;  %v452_v55 = vsel %vm289_vm0, %v2119_v51, 0.0 }
  0x4c   : > { %438 = vadd.xlane.f32.xlu1 %v437_v58  ;;  %435 = vadd.xlane.f32.xlu0 %v434_v59  ;;  %v2126_v58 = vld [vmem:[%s1895_s23 + $0x148] sm:$0xff]  ;;  %v2129_v59 = vld [vmem:[%s1895_s23 + $0x140] sm:$0xff] }
  0x4d   : > { %2788 = vst [vmem:[#allocation27_spill] sm:$0xff] %v2126_v58  ;;  %2789 = vst [vmem:[#allocation28_spill] sm:$0xff] %v2129_v59 }
  0x50   : > { %444 = vadd.xlane.f32.xlu1 %v443_v62  ;;  %441 = vadd.xlane.f32.xlu0 %v440_v63  ;;  %v413_v62 = vsel %vm289_vm0, %v2126_v58, 0.0  ;;  %v410_v63 = vsel %vm289_vm0, %v2129_v59, 0.0 }
  0x54   : > { %330 = vadd.xlane.f32.xlu1 %v329_v4  ;;  %327 = vadd.xlane.f32.xlu0 %v326_v5  ;;  %v2136_v4 = vld [vmem:[%s1895_s23 + $0x1c8] sm:$0xff]  ;;  %v2139_v5 = vld [vmem:[%s1895_s23 + $0x1c0] sm:$0xff] }
  0x55   : > { %2790 = vst [vmem:[#allocation29_spill] sm:$0xff] %v2136_v4  ;;  %2791 = vst [vmem:[#allocation30_spill] sm:$0xff] %v2139_v5 }
  0x58   : > { %378 = vadd.xlane.f32.xlu1 %v377_v8  ;;  %375 = vadd.xlane.f32.xlu0 %v374_v9  ;;  %v461_v8 = vsel %vm289_vm0, %v2136_v4, 0.0  ;;  %v458_v9 = vsel %vm289_vm0, %v2139_v5, 0.0 }
  0x5c   : > { %402 = vadd.xlane.f32.xlu1 %v401_v14  ;;  %399 = vadd.xlane.f32.xlu0 %v398_v15  ;;  %v2146_v14 = vld [vmem:[%s1895_s23 + $0x158] sm:$0xff]  ;;  %v2149_v15 = vld [vmem:[%s1895_s23 + $0x150] sm:$0xff] }
  0x5d   : > { %2792 = vst [vmem:[#allocation31_spill] sm:$0xff] %v2146_v14  ;;  %2793 = vst [vmem:[#allocation32_spill] sm:$0xff] %v2149_v15 }
  0x60   : > { %450 = vadd.xlane.f32.xlu1 %v449_v22  ;;  %447 = vadd.xlane.f32.xlu0 %v446_v23  ;;  %v419_v22 = vsel %vm289_vm0, %v2146_v14, 0.0  ;;  %v416_v23 = vsel %vm289_vm0, %v2149_v15, 0.0 }
  0x64   : > { %336 = vadd.xlane.f32.xlu1 %v335_v30  ;;  %333 = vadd.xlane.f32.xlu0 %v332_v31  ;;  %v2156_v30 = vld [vmem:[%s1895_s23 + $0x1d8] sm:$0xff]  ;;  %v2159_v31 = vld [vmem:[%s1895_s23 + $0x1d0] sm:$0xff] }
  0x65   : > { %2794 = vst [vmem:[#allocation33_spill] sm:$0xff] %v2156_v30  ;;  %2795 = vst [vmem:[#allocation34_spill] sm:$0xff] %v2159_v31 }
  0x68   : > { %384 = vadd.xlane.f32.xlu1 %v383_v38  ;;  %381 = vadd.xlane.f32.xlu0 %v380_v39  ;;  %v467_v38 = vsel %vm289_vm0, %v2156_v30, 0.0  ;;  %v464_v39 = vsel %vm289_vm0, %v2159_v31, 0.0 }
  0x6c   : > { %408 = vadd.xlane.f32.xlu1 %v407_v46  ;;  %405 = vadd.xlane.f32.xlu0 %v404_v47  ;;  %v2166_v46 = vld [vmem:[%s1895_s23 + $0x168] sm:$0xff]  ;;  %v2169_v47 = vld [vmem:[%s1895_s23 + $0x160] sm:$0xff] }
  0x6d   : > { %2796 = vst [vmem:[#allocation35_spill] sm:$0xff] %v2166_v46  ;;  %2797 = vst [vmem:[#allocation36_spill] sm:$0xff] %v2169_v47 }
  0x70   : > { %456 = vadd.xlane.f32.xlu1 %v455_v54  ;;  %453 = vadd.xlane.f32.xlu0 %v452_v55  ;;  %v425_v54 = vsel %vm289_vm0, %v2166_v46, 0.0  ;;  %v422_v55 = vsel %vm289_vm0, %v2169_v47, 0.0 }
  0x74   : > { %414 = vadd.xlane.f32.xlu1 %v413_v62  ;;  %411 = vadd.xlane.f32.xlu0 %v410_v63  ;;  %v2176_v62 = vld [vmem:[%s1895_s23 + $0x1e8] sm:$0xff]  ;;  %v2179_v63 = vld [vmem:[%s1895_s23 + $0x1e0] sm:$0xff] }
  0x75   : > { %2798 = vst [vmem:[#allocation37_spill] sm:$0xff] %v2176_v62  ;;  %2799 = vst [vmem:[#allocation38_spill] sm:$0xff] %v2179_v63 }
  0x78   : > { %462 = vadd.xlane.f32.xlu1 %v461_v8  ;;  %459 = vadd.xlane.f32.xlu0 %v458_v9  ;;  %v473_v8 = vsel %vm289_vm0, %v2176_v62, 0.0  ;;  %v470_v9 = vsel %vm289_vm0, %v2179_v63, 0.0 }
  0x7c   : > { %420 = vadd.xlane.f32.xlu1 %v419_v22  ;;  %417 = vadd.xlane.f32.xlu0 %v416_v23  ;;  %v2186_v22 = vld [vmem:[%s1895_s23 + $0x178] sm:$0xff]  ;;  %v2189_v23 = vld [vmem:[%s1895_s23 + $0x170] sm:$0xff] }
  0x7d   : > { %2800 = vst [vmem:[#allocation39_spill] sm:$0xff] %v2186_v22  ;;  %2801 = vst [vmem:[#allocation40_spill] sm:$0xff] %v2189_v23 }
  0x80   : > { %468 = vadd.xlane.f32.xlu1 %v467_v38  ;;  %465 = vadd.xlane.f32.xlu0 %v464_v39  ;;  %v431_v38 = vsel %vm289_vm0, %v2186_v22, 0.0  ;;  %v428_v39 = vsel %vm289_vm0, %v2189_v23, 0.0 }
  0x84   : > { %426 = vadd.xlane.f32.xlu1 %v425_v54  ;;  %423 = vadd.xlane.f32.xlu0 %v422_v55  ;;  %v2196_v54 = vld [vmem:[%s1895_s23 + $0x1f8] sm:$0xff]  ;;  %v2199_v55 = vld [vmem:[%s1895_s23 + $0x1f0] sm:$0xff] }
  0x85   : > { %2802 = vst [vmem:[#allocation41_spill] sm:$0xff] %v2196_v54  ;;  %2803 = vst [vmem:[#allocation42_spill] sm:$0xff] %v2199_v55  ;;  %v479_v62 = vsel %vm289_vm0, %v2196_v54, 0.0  ;;  %v476_v63 = vsel %vm289_vm0, %v2199_v55, 0.0 }
  0x88   : > { %474 = vadd.xlane.f32.xlu1 %v473_v8  ;;  %471 = vadd.xlane.f32.xlu0 %v470_v9  ;;  %v546_v8 = vlaneseq }
  0x8a   : > { %v547_v9 = vand.u32 127, %v546_v8  ;;  %v2205_v46 = vshrl.u32 %v546_v8, 7 }
  0x8c   : > { %432 = vadd.xlane.f32.xlu1 %v431_v38  ;;  %429 = vadd.xlane.f32.xlu0 %v428_v39  ;;  %v552_v47 = vadd.s32 4294967288, %v547_v9  ;;  %v2210_v10 = vsub.s32 %v547_v9, %v2205_v46 }
  0x8e   : > { %v2213_v38 = vsub.s32 %v552_v47, %v2205_v46 }
  0x90   : > { %480 = vadd.xlane.f32.xlu1 %v479_v62  ;;  %477 = vadd.xlane.f32.xlu0 %v476_v63 }
  0xa1   : > { %v2207_v58 = vpop.xlane.xlu1 %297  ;;  %v292_v59 = vpop.xlane.xlu0 %291 }
  0xa2   : > { %v551_v62 = vrot.slane %v292_v59, %v2210_v10  ;;  %v562_v51 = vrot.slane %v2207_v58, %v2210_v10 }
  0xa5   : > { %v301_v39 = vpop.xlane.xlu1 %300  ;;  %v295_v11 = vpop.xlane.xlu0 %294 }
  0xa6   : > { %v556_v63 = vrot.slane %v295_v11, %v2213_v38 }
  0xa8   : > { %v2218_v8 = vsel %vm557_vm1, %v556_v63, %v551_v62 }
  0xa9   : > { %v343_v26 = vpop.xlane.xlu1 %342  ;;  %v340_v27 = vpop.xlane.xlu0 %339 }
  0xaa   : > { %v629_v4 = vrot.slane %v343_v26, %v2213_v38  ;;  %v625_v9 = vrot.slane %v340_v27, %v2210_v10 }
  0xac   : > { %v630_v59 = vsel %vm557_vm1, %v629_v4, %v625_v9 }
  0xad   : > { %v349_v5 = vpop.xlane.xlu1 %348  ;;  %v346_v54 = vpop.xlane.xlu0 %345 }
  0xae   : > { %v638_v47 = vrot.slane %v349_v5, %v2213_v38  ;;  %v634_v55 = vrot.slane %v346_v54, %v2210_v10 }
  0xb0   : > { %v639_v11 = vsel %vm557_vm1, %v638_v47, %v634_v55 }
  0xb1   : > { %v2227_v62 = vsel %vm838_vm2, %v639_v11, %v630_v59  ;;  %v307_v63 = vpop.xlane.xlu1 %306  ;;  %v304_v18 = vpop.xlane.xlu0 %303 }
  0xb5   : > { %v2229_v19 = vpop.xlane.xlu1 %354  ;;  %v2231_v26 = vpop.xlane.xlu0 %351 }
  0xb6   : > { %v647_v6 = vrot.slane %v2229_v19, %v2213_v38  ;;  %v643_v7 = vrot.slane %v2231_v26, %v2210_v10 }
  0xb9   : > { %v313_v27 = vpop.xlane.xlu1 %312  ;;  %v310_v22 = vpop.xlane.xlu0 %309 }
  0xba   : > { %v584_v52 = vrot.slane %v313_v27, %v2213_v38  ;;  %v580_v53 = vrot.slane %v310_v22, %v2210_v10 }
  0xbc   : > { %v585_v19 = vsel %vm557_vm1, %v584_v52, %v580_v53 }
  0xbd   : > { %v2233_v23 = vpop.xlane.xlu1 %360  ;;  %v2235_v5 = vpop.xlane.xlu0 %357 }
  0xbe   : > { %v656_v26 = vrot.slane %v2233_v23, %v2213_v38 }
  0xc1   : > { %v319_v54 = vpop.xlane.xlu1 %318  ;;  %v316_v48 = vpop.xlane.xlu0 %315 }
  0xc2   : > { %v589_v58 = vrot.slane %v316_v48, %v2210_v10 }
  0xc5   : > { %v2237_v4 = vpop.xlane.xlu1 %366  ;;  %v2239_v55 = vpop.xlane.xlu0 %363 }
  0xc9   : > { %v325_v9 = vpop.xlane.xlu1 %324  ;;  %v322_v47 = vpop.xlane.xlu0 %321 }
  0xca   : > { %v602_v27 = vrot.slane %v325_v9, %v2213_v38  ;;  %v598_v22 = vrot.slane %v322_v47, %v2210_v10  ;;  %v665_v9 = vrot.slane %v2237_v4, %v2213_v38  ;;  %v661_v47 = vrot.slane %v2239_v55, %v2210_v10 }
  0xcc   : > { %v603_v52 = vsel %vm557_vm1, %v602_v27, %v598_v22 }
  0xcd   : > { %v2241_v59 = vpop.xlane.xlu1 %372  ;;  %v2243_v11 = vpop.xlane.xlu0 %369 }
  0xce   : > { %v674_v53 = vrot.slane %v2241_v59, %v2213_v38  ;;  %v670_v23 = vrot.slane %v2243_v11, %v2210_v10  ;;  %v666_v11 = vsel %vm557_vm1, %v665_v9, %v661_v47 }
  0xd1   : > { %v391_v49 = vpop.xlane.xlu1 %390  ;;  %v388_v14 = vpop.xlane.xlu0 %387 }
  0xd2   : > { %v701_v15 = vrot.slane %v391_v49, %v2213_v38  ;;  %v697_v1 = vrot.slane %v388_v14, %v2210_v10  ;;  %v566_v14 = vrot.slane %v301_v39, %v2213_v38 }
  0xd4   : > { %v2248_v3 = vsel %vm557_vm1, %v701_v15, %v697_v1  ;;  %v575_v1 = vrot.slane %v307_v63, %v2213_v38  ;;  %v571_v15 = vrot.slane %v304_v18, %v2210_v10  ;;  %v567_v39 = vsel %vm557_vm1, %v566_v14, %v562_v51 }
  0xd5   : > { %v2250_v42 = vpop.xlane.xlu1 %396  ;;  %v2252_v43 = vpop.xlane.xlu0 %393  ;;  %v593_v18 = vrot.slane %v319_v54, %v2213_v38  ;;  %v839_v48 = vsel %vm838_vm2, %v567_v39, %v2218_v8  ;;  %v652_v54 = vrot.slane %v2235_v5, %v2210_v10  ;;  %v648_v8 = vsel %vm557_vm1, %v647_v6, %v643_v7 }
  0xd6   : > { %v576_v63 = vsel %vm557_vm1, %v575_v1, %v571_v15 }
  0xd7   : > { %v657_v6 = vsel %vm557_vm1, %v656_v26, %v652_v54 }
  0xd9   : > { %v2254_v40 = vpop.xlane.xlu1 %438  ;;  %v2256_v41 = vpop.xlane.xlu0 %435 }
  0xdd   : > { %v2258_v30 = vpop.xlane.xlu1 %444  ;;  %v2260_v31 = vpop.xlane.xlu0 %441 }
  0xe1   : > { %v331_v24 = vpop.xlane.xlu1 %330  ;;  %v328_v25 = vpop.xlane.xlu0 %327 }
  0xe2   : > { %v611_v60 = vrot.slane %v331_v24, %v2213_v38  ;;  %v607_v51 = vrot.slane %v328_v25, %v2210_v10  ;;  %v841_v24 = vsel %vm840_vm3, %v576_v63, %v839_v48  ;;  %v594_v25 = vsel %vm557_vm1, %v593_v18, %v589_v58 }
  0xe3   : > { %v843_v5 = vsel %vm842_vm4, %v585_v19, %v841_v24 }
  0xe4   : > { %v612_v15 = vsel %vm557_vm1, %v611_v60, %v607_v51  ;;  %v845_v7 = vsel %vm844_vm5, %v594_v25, %v843_v5  ;;  %v853_v60 = vsel %vm840_vm3, %v648_v8, %v2227_v62 }
  0xe5   : > { %v379_v49 = vpop.xlane.xlu1 %378  ;;  %v376_v50 = vpop.xlane.xlu0 %375  ;;  %v847_v58 = vsel %vm846_vm6, %v603_v52, %v845_v7  ;;  %v854_v22 = vsel %vm842_vm4, %v657_v6, %v853_v60 }
  0xe6   : > { %v683_v39 = vrot.slane %v379_v49, %v2213_v38  ;;  %v679_v4 = vrot.slane %v376_v50, %v2210_v10  ;;  %v675_v49 = vsel %vm557_vm1, %v674_v53, %v670_v23  ;;  %v849_v27 = vsel %vm848_vm7, %v612_v15, %v847_v58 }
  0xe7   : > { %v855_v54 = vsel %vm844_vm5, %v666_v11, %v854_v22  ;;  %v710_v11 = vrot.slane %v2250_v42, %v2213_v38  ;;  %v706_v58 = vrot.slane %v2252_v43, %v2210_v10  ;;  %v782_v43 = vrot.slane %v2258_v30, %v2213_v38 }
  0xe8   : > { %v684_v51 = vsel %vm557_vm1, %v683_v39, %v679_v4  ;;  %v856_v9 = vsel %vm846_vm6, %v675_v49, %v855_v54 }
  0xe9   : > { %v2267_v56 = vpop.xlane.xlu1 %402  ;;  %v2269_v57 = vpop.xlane.xlu0 %399  ;;  %v857_v8 = vsel %vm848_vm7, %v684_v51, %v856_v9  ;;  %v711_v22 = vsel %vm557_vm1, %v710_v11, %v706_v58  ;;  %v773_v51 = vrot.slane %v2254_v40, %v2213_v38 }
  0xed   : > { %v2285_v14 = vpop.xlane.xlu1 %450  ;;  %v2287_v1 = vpop.xlane.xlu0 %447 }
  0xf1   : > { %v337_v63 = vpop.xlane.xlu1 %336  ;;  %v334_v55 = vpop.xlane.xlu0 %333 }
  0xf2   : > { %v620_v18 = vrot.slane %v337_v63, %v2213_v38  ;;  %v616_v59 = vrot.slane %v334_v55, %v2210_v10 }
  0xf4   : > { %v621_v50 = vsel %vm557_vm1, %v620_v18, %v616_v59  ;;  %v1844_v59 = vmov 0.0|0.0  }
  0xf5   : > { %v385_v48 = vpop.xlane.xlu1 %384  ;;  %v382_v19 = vpop.xlane.xlu0 %381  ;;  %v851_v26 = vsel %vm850_vm8, %v621_v50, %v849_v27  ;;  %1795 = vmatprep.subr.bf16.mxu0 %v1844_v59  ;;  %v719_v50 = vrot.slane %v2267_v56, %v2213_v38  ;;  %v715_v27 = vrot.slane %v2269_v57, %v2210_v10 }
  0xf6   : > { %v692_v24 = vrot.slane %v385_v48, %v2213_v38  ;;  %v688_v62 = vrot.slane %v382_v19, %v2210_v10  ;;  %v877_v25 = vsel %vm289_vm0, %v851_v26, 0.0  ;;  %v769_v48 = vrot.slane %v2256_v41, %v2210_v10 }
  0xf7   : > { %878 = vadd.xlane.f32.xlu0 %v877_v25  ;;  %v778_v26 = vrot.slane %v2260_v31, %v2210_v10  ;;  %v720_v54 = vsel %vm557_vm1, %v719_v50, %v715_v27  ;;  %v791_v41 = vrot.slane %v2285_v14, %v2213_v38  ;;  %v859_v25 = vsel %vm838_vm2, %v711_v22, %v2248_v3 }
  0xf8   : > { %v693_v47 = vsel %vm557_vm1, %v692_v24, %v688_v62  ;;  %v787_v62 = vrot.slane %v2287_v1, %v2210_v10  ;;  %v774_v9 = vsel %vm557_vm1, %v773_v51, %v769_v48 }
  0xf9   : > { %v409_v52 = vpop.xlane.xlu1 %408  ;;  %v406_v53 = vpop.xlane.xlu0 %405  ;;  %v858_v23 = vsel %vm850_vm8, %v693_v47, %v857_v8  ;;  %v783_v14 = vsel %vm557_vm1, %v782_v43, %v778_v26 }
  0xfa   : > { %v880_v5 = vsel %vm289_vm0, %v858_v23, 0.0  ;;  %v728_v56 = vrot.slane %v409_v52, %v2213_v38  ;;  %v724_v57 = vrot.slane %v406_v53, %v2210_v10 }
  0xfb   : > { %881 = vadd.xlane.f32.xlu1 %v880_v5 }
  0xfc   : > { %v729_v23 = vsel %vm557_vm1, %v728_v56, %v724_v57 }
  0xfd   : > { %v457_v15 = vpop.xlane.xlu1 %456  ;;  %v454_v39 = vpop.xlane.xlu0 %453 }
  0xfe   : > { %v800_v1 = vrot.slane %v457_v15, %v2213_v38  ;;  %v796_v5 = vrot.slane %v454_v39, %v2210_v10 }
 0x101   : > { %v415_v4 = vpop.xlane.xlu1 %414  ;;  %v412_v63 = vpop.xlane.xlu0 %411 }
 0x102   : > { %v737_v24 = vrot.slane %v415_v4, %v2213_v38  ;;  %v733_v40 = vrot.slane %v412_v63, %v2210_v10  ;;  %v860_v4 = vsel %vm840_vm3, %v720_v54, %v859_v25 }
 0x103   : > { %v861_v15 = vsel %vm842_vm4, %v729_v23, %v860_v4 }
 0x104   : > { %v738_v3 = vsel %vm557_vm1, %v737_v24, %v733_v40 }
 0x105   : > { %v463_v55 = vpop.xlane.xlu1 %462  ;;  %v460_v6 = vpop.xlane.xlu0 %459  ;;  %v862_v48 = vsel %vm844_vm5, %v738_v3, %v861_v15  ;;  %v970_v15 = vld [vmem:[%s2719_s3] sm:$0xff] }
 0x106   : > { %v809_v63 = vrot.slane %v463_v55, %v2213_v38  ;;  %1789 = vmatprep.mubr.msk.f32.mxu1 %vm978_vm11, %v970_v15 }
 0x109   : > { %v421_v7 = vpop.xlane.xlu1 %420  ;;  %v418_v18 = vpop.xlane.xlu0 %417 }
 0x10a   : > { %v746_v30 = vrot.slane %v421_v7, %v2213_v38  ;;  %v742_v31 = vrot.slane %v418_v18, %v2210_v10  ;;  %v805_v7 = vrot.slane %v460_v6, %v2210_v10  ;;  %v792_v18 = vsel %vm557_vm1, %v791_v41, %v787_v62 }
 0x10b   : > { %v801_v6 = vsel %vm557_vm1, %v800_v1, %v796_v5  ;;  %v1846_v1 = vmov 0.0  }
 0x10c   : > { %v747_v11 = vsel %vm557_vm1, %v746_v30, %v742_v31  ;;  %1784 = vmatprep.mubr.msk.f32.mxu0 %vm1845_vm9, %v1846_v1 }
 0x10d   : > { %v469_v60 = vpop.xlane.xlu1 %468  ;;  %v466_v49 = vpop.xlane.xlu0 %465  ;;  %v863_v43 = vsel %vm846_vm6, %v747_v11, %v862_v48  ;;  %v973_v48 = vld [vmem:[%s2719_s3 + $0x18] sm:$0xff] }
 0x10e   : > { %v818_v58 = vrot.slane %v469_v60, %v2213_v38  ;;  %v814_v50 = vrot.slane %v466_v49, %v2210_v10  ;;  %v866_v49 = vsel %vm838_vm2, %v783_v14, %v774_v9 }
 0x10f   : > { %v867_v26 = vsel %vm840_vm3, %v792_v18, %v866_v49  ;;  %v974_v49 = vld [vmem:[%s2720_s4] sm:$0xff] }
 0x110   : > { %v819_v56 = vsel %vm557_vm1, %v818_v58, %v814_v50  ;;  %v868_v24 = vsel %vm842_vm4, %v801_v6, %v867_v26  ;;  %v893_v50 = vld [vmem:[%s2717_s1] sm:$0x3]  ;;  %v972_v6 = vld [vmem:[%s2719_s3 + $0x10] sm:$0xff] }
 0x111   : > { %v427_v42 = vpop.xlane.xlu1 %426  ;;  %v424_v19 = vpop.xlane.xlu0 %423 }
 0x112   : > { %v755_v47 = vrot.slane %v427_v42, %v2213_v38  ;;  %v751_v8 = vrot.slane %v424_v19, %v2210_v10  ;;  %v810_v19 = vsel %vm557_vm1, %v809_v63, %v805_v7 }
 0x113   : > { %v869_v31 = vsel %vm844_vm5, %v810_v19, %v868_v24  ;;  %v976_v24 = vld [vmem:[%s2720_s4 + $0x10] sm:$0xff] }
 0x114   : > { %v756_v39 = vsel %vm557_vm1, %v755_v47, %v751_v8  ;;  %v870_v8 = vsel %vm846_vm6, %v819_v56, %v869_v31 }
 0x115   : > { %v475_v52 = vpop.xlane.xlu1 %474  ;;  %v472_v53 = vpop.xlane.xlu0 %471  ;;  %v864_v54 = vsel %vm848_vm7, %v756_v39, %v863_v43 }
 0x116   : > { %v827_v27 = vrot.slane %v475_v52, %v2213_v38  ;;  %v823_v22 = vrot.slane %v472_v53, %v2210_v10 }
 0x118   : > { %v828_v40 = vsel %vm557_vm1, %v827_v27, %v823_v22 }
 0x119   : > { %v433_v51 = vpop.xlane.xlu1 %432  ;;  %v430_v55 = vpop.xlane.xlu0 %429  ;;  %v871_v53 = vsel %vm848_vm7, %v828_v40, %v870_v8 }
 0x11a   : > { %v764_v42 = vrot.slane %v433_v51, %v2213_v38  ;;  %v760_v60 = vrot.slane %v430_v55, %v2210_v10  ;;  %v971_v55 = vld [vmem:[%s2719_s3 + $0x8] sm:$0xff] }
 0x11c   : > { %v765_v57 = vsel %vm557_vm1, %v764_v42, %v760_v60  ;;  %v1847_v42 = vmov 0   ;;  %v975_v60 = vld [vmem:[%s2720_s4 + $0x8] sm:$0xff] }
 0x11d   : > { %v481_v41 = vpop.xlane.xlu1 %480  ;;  %v478_v62 = vpop.xlane.xlu0 %477  ;;  %v865_v30 = vsel %vm850_vm8, %v765_v57, %v864_v54  ;;  %1814 = vset.pattern.permute.xlu1 %v1847_v42  ;;  %1815 = vset.pattern.permute.xlu0 %v1847_v42  ;;  %v977_v57 = vld [vmem:[%s2720_s4 + $0x18] sm:$0xff] }
 0x11e   : > { %v836_v25 = vrot.slane %v481_v41, %v2213_v38  ;;  %v832_v9 = vrot.slane %v478_v62, %v2210_v10  ;;  %v883_v47 = vsel %vm289_vm0, %v865_v30, 0.0 }
 0x11f   : > { %884 = vadd.xlane.f32.xlu0 %v883_v47 }
 0x120   : > { %v837_v52 = vsel %vm557_vm1, %v836_v25, %v832_v9 }
 0x121   : > { %v872_v14 = vsel %vm850_vm8, %v837_v52, %v871_v53 }
 0x122   : > { %v886_v23 = vsel %vm289_vm0, %v872_v14, 0.0  ;;  %v1848_v14 = vmov 1966171168  }
 0x123   : > { %887 = vadd.xlane.f32.xlu1 %v886_v23  ;;  %v1110_v23 = vunpack.c.l.s4 %v1848_v14 }
 0x184   : > { %v879_v38 = vpop.xlane.xlu0 %878 }
 0x185   : > { %v889_v10 = vmul.f32 0.00390625, %v879_v38  ;;  %v1111_v38 = vunpack.c.0.s8 %v1110_v23 }
 0x188   : > { %v882_v5 = vpop.xlane.xlu1 %881 }
 0x189   : > { %v890_v4 = vmul.f32 0.00390625, %v882_v5 }
 0x18b   : > { %v1796_v3 = vpack.c.bf16 %v890_v4, %v889_v10  ;;  %v2440_v4 = vsub.s32 %v1111_v38, %v2205_v46 }
 0x18d   : > { %1797 = vmatpush3.bf16.msra.mxu0 %v1796_v3 }
 0x18e   : > { %1798 = vmatprep.subr.bf16.mxu0 %v1844_v59  ;;  %v894_v59 = vld [vmem:[%s2718_s2] sm:$0x3] }
 0x1ac   : > { %v885_v63 = vpop.xlane.xlu0 %884 }
 0x1ad   : > { %v891_v18 = vmul.f32 0.00390625, %v885_v63 }
 0x1b0   : > { %v888_v7 = vpop.xlane.xlu1 %887 }
 0x1b1   : > { %v892_v11 = vmul.f32 0.00390625, %v888_v7 }
 0x1b3   : > { %v1799_v58 = vpack.c.bf16 %v892_v11, %v891_v18  ;;  %v2444_v11 = vsub.s32 0, %v2205_v46 }
 0x1b5   : > { %1800 = vmatpush3.bf16.msra.mxu0 %v1799_v58 }
 0x1b8   : > { %1785 = vmatmul.mubr.msk.f32.vlgmr.msra.gmra.mrb[0].mxu0 %vm895_vm10, %v893_v50 }
 0x28b   : > { %v965_v39 = vpop.f32.mrb[0].mxu0 }
 0x28c   : > { %v966_v27 = vadd.f32 %v965_v39, %v894_v59  ;;  %v1786_v22 = vpop.f32.mrb[1].mxu0 }
 0x28e   : > { %v969_v51 = vmax.f32 %v966_v27, 0.0 }
 0x290   : > { %1787 = vmatprep.subr.msk.mxu1 %vm991_vm12, %v969_v51 }
 0x291   : > { %1788 = vmatpush3.msk.msra.mxu1 %vm991_vm12, %v969_v51 }
 0x292   : > { %1790 = vmatmul.mubr.msk.f32.vlgmr.msra.gmra.mrb[0].mxu1 %vm978_vm11, %v971_v55 }
 0x293   : > { %1792 = vmatprep.mubr.msk.f32.mxu1 %vm978_vm11, %v972_v6 }
 0x296   : > { %1793 = vmatmul.mubr.msk.f32.gmra.mrb[2].mxu1 %vm978_vm11, %v973_v48 }
 0x365   : > { %v1791_v19 = vpop.f32.mrb[0].mxu1 }
 0x366   : > { %v1067_v43 = vadd.f32 %v1791_v19, %v975_v60  ;;  %v1061_v26 = vpop.f32.mrb[1].mxu1 }
 0x367   : > { %v1062_v56 = vadd.f32 %v1061_v26, %v974_v49 }
 0x368   : > { %v1759_v54 = vmul.f32 -1.442695, %v1067_v43 }
 0x369   : > { %v1758_v40 = vmul.f32 -1.442695, %v1062_v56  ;;  %v1794_v41 = vpop.f32.mrb[2].mxu1 }
 0x36a   : > { %1816 = vpow2.f32 %v1759_v54  ;;  %v1077_v62 = vadd.f32 %v1794_v41, %v977_v57  ;;  %v1071_v30 = vpop.f32.mrb[3].mxu1 }
 0x36b   : > { %1818 = vpow2.f32 %v1758_v40  ;;  %v1072_v31 = vadd.f32 %v1071_v30, %v976_v24 }
 0x36c   : > { %v1761_v25 = vmul.f32 -1.442695, %v1077_v62 }
 0x36d   : > { %v1760_v9 = vmul.f32 -1.442695, %v1072_v31 }
 0x36e   : > { %1820 = vpow2.f32 %v1761_v25 }
 0x36f   : > { %1822 = vpow2.f32 %v1760_v9 }
 0x374   : > { %v1817_v47 = vpop.eup %1816 }
 0x375   : > { %v1819_v8 = vpop.eup %1818  ;;  %v1093_v52 = vadd.f32 1.0, %v1817_v47 }
 0x376   : > { %v1092_v53 = vadd.f32 1.0, %v1819_v8 }
 0x377   : > { %1824 = vrcp.f32 %v1093_v52 }
 0x378   : > { %1826 = vrcp.f32 %v1092_v53  ;;  %v1821_v1 = vpop.eup %1820 }
 0x379   : > { %v1095_v5 = vadd.f32 1.0, %v1821_v1  ;;  %v1823_v10 = vpop.eup %1822 }
 0x37a   : > { %v1094_v3 = vadd.f32 1.0, %v1823_v10 }
 0x37b   : > { %1828 = vrcp.f32 %v1095_v5 }
 0x37c   : > { %1830 = vrcp.f32 %v1094_v3 }
 0x381   : > { %v1825_v63 = vpop.eup %1824 }
 0x382   : > { %v1827_v7 = vpop.eup %1826  ;;  %v1164_v18 = vrot.slane %v1825_v63, %v2440_v4  ;;  %v1157_v58 = vcombine.high %v1825_v63, %v1825_v63 }
 0x383   : > { %v1115_v50 = vrot.slane %v1827_v7, %v2440_v4  ;;  %v1108_v40 = vcombine.high %v1827_v7, %v1827_v7 }
 0x384   : > { %v1180_v15 = vrot.slane %v1164_v18, %v2440_v4  ;;  %v1172_v59 = vcombine.high %v1164_v18, %v1164_v18  ;;  %v1171_v51 = vrot.slane %v1157_v58, %v2440_v4 }
 0x385   : > { %v1131_v39 = vrot.slane %v1115_v50, %v2440_v4  ;;  %v1829_v46 = vpop.eup %1828  ;;  %v1123_v60 = vcombine.high %v1115_v50, %v1115_v50  ;;  %v1122_v53 = vrot.slane %v1108_v40, %v2440_v4 }
 0x386   : > { %v1339_v27 = vrot.slane %v1180_v15, %v2444_v11  ;;  %v1202_v22 = vcombine.high %v1180_v15, %v1180_v15  ;;  %v1194_v6 = vrot.slane %v1172_v59, %v2440_v4  ;;  %v1187_v42 = vrot.slane %v1171_v51, %v2440_v4  ;;  %v1831_v57 = vpop.eup %1830 }
 0x387   : > { %v1307_v55 = vrot.slane %v1131_v39, %v2444_v11  ;;  %v1173_v43 = vcombine.high %v1171_v51, %v1171_v51  ;;  %v1262_v26 = vrot.slane %v1829_v46, %v2440_v4  ;;  %v1255_v56 = vcombine.high %v1829_v46, %v1829_v46 }
 0x388   : > { %1465 = vperm.xlu1 %1814, %v1339_v27   ;;  %v1347_v48 = vrot.slane %v1202_v22, %v2444_v11  ;;  %v1343_v49 = vrot.slane %v1194_v6, %v2444_v11  ;;  %v1204_v19 = vcombine.high %v1194_v6, %v1194_v6  ;;  %v1355_v54 = vrot.slane %v1187_v42, %v2444_v11 }
 0x389   : > { %1433 = vperm.xlu0 %1815, %v1307_v55   ;;  %v1145_v24 = vrot.slane %v1123_v60, %v2440_v4  ;;  %v1201_v62 = vrot.slane %v1173_v43, %v2440_v4  ;;  %v1269_v30 = vrot.slane %v1255_v56, %v2440_v4  ;;  %v1206_v31 = vcombine.high %v1831_v57, %v1831_v57 }
 0x38a   : > { %v1351_v41 = vrot.slane %v1204_v19, %v2444_v11  ;;  %v1270_v25 = vcombine.high %v1262_v26, %v1262_v26  ;;  %v1213_v9 = vrot.slane %v1831_v57, %v2440_v4  ;;  %v1153_v52 = vcombine.high %v1131_v39, %v1131_v39 }
 0x38b   : > { %v1220_v47 = vrot.slane %v1206_v31, %v2440_v4  ;;  %v1311_v8 = vrot.slane %v1145_v24, %v2444_v11  ;;  %v1359_v14 = vrot.slane %v1201_v62, %v2444_v11  ;;  %v1205_v23 = vcombine.high %v1201_v62, %v1201_v62 }
 0x38c   : > { %1473 = vperm.xlu1 %1814, %v1347_v48   ;;  %v2468_v1 = vrot.slane %v1269_v30, %v2440_v4  ;;  %v1292_v5 = vrot.slane %v1270_v25, %v2440_v4  ;;  %v1221_v10 = vcombine.high %v1213_v9, %v1213_v9  ;;  %v1315_v3 = vrot.slane %v1153_v52, %v2444_v11 }
 0x38d   : > { %1469 = vperm.xlu0 %1815, %v1343_v49   ;;  %v2471_v38 = vrot.slane %v1220_v47, %v2440_v4  ;;  %v1138_v63 = vrot.slane %v1122_v53, %v2440_v4  ;;  %v1367_v58 = vrot.slane %v1205_v23, %v2444_v11  ;;  %v1203_v51 = vcombine.high %v1187_v42, %v1187_v42 }
 0x38e   : > { %v1301_v7 = vcombine.high %v2468_v1, %v2468_v1  ;;  %v1407_v59 = vrot.slane %v1292_v5, %v2444_v11  ;;  %v1243_v39 = vrot.slane %v1221_v10, %v2440_v4  ;;  %v1278_v55 = vrot.slane %v1262_v26, %v2440_v4 }
 0x38f   : > { %v1387_v18 = vrot.slane %v2471_v38, %v2444_v11  ;;  %v1252_v50 = vcombine.high %v2471_v38, %v2471_v38  ;;  %v1323_v22 = vrot.slane %v1138_v63, %v2444_v11  ;;  %v1302_v46 = vcombine.high %v1292_v5, %v1292_v5  ;;  %v1834_v38 = vld [vmem:[%s1895_s23] sm:$0xff] }
 0x390   : > { %1481 = vperm.xlu1 %1814, %v1355_v54   ;;  %v1427_v15 = vrot.slane %v1301_v7, %v2444_v11  ;;  %v1375_v6 = vrot.slane %v1243_v39, %v2444_v11  ;;  %v1271_v48 = vcombine.high %v1269_v30, %v1269_v30  ;;  %v1363_v60 = vrot.slane %v1203_v51, %v2444_v11 }
 0x391   : > { %1477 = vperm.xlu0 %1815, %v1351_v41   ;;  %v1395_v27 = vrot.slane %v1252_v50, %v2444_v11  ;;  %v1403_v49 = vrot.slane %v1278_v55, %v2444_v11  ;;  %v1415_v19 = vrot.slane %v1302_v46, %v2444_v11  ;;  %v1155_v56 = vcombine.high %v1145_v24, %v1145_v24  ;;  %v1832_v50 = vld [vmem:[%s1895_s23 + $0x80] sm:$0xff] }
 0x392   : > { %v1299_v43 = vrot.slane %v1271_v48, %v2440_v4  ;;  %v1124_v42 = vcombine.high %v1122_v53, %v1122_v53  ;;  %v1253_v40 = vcombine.high %v1243_v39, %v1243_v39  ;;  %v1222_v41 = vcombine.high %v1220_v47, %v1220_v47  ;;  %v1833_v39 = vld [vmem:[%s1895_s23 + $0x88] sm:$0xff] }
 0x393   : > { %v1319_v57 = vrot.slane %v1155_v56, %v2444_v11  ;;  %v1154_v30 = vcombine.high %v1138_v63, %v1138_v63 }
 0x394   : > { %1437 = vperm.xlu1 %1814, %v1311_v8   ;;  %v1423_v26 = vrot.slane %v1299_v43, %v2444_v11  ;;  %v1152_v54 = vrot.slane %v1124_v42, %v2440_v4  ;;  %v1383_v31 = vrot.slane %v1253_v40, %v2444_v11  ;;  %v1250_v24 = vrot.slane %v1222_v41, %v2440_v4 }
 0x395   : > { %1485 = vperm.xlu0 %1815, %v1359_v14   ;;  %v1331_v25 = vrot.slane %v1154_v30, %v2444_v11  ;;  %v1229_v8 = vrot.slane %v1213_v9, %v2440_v4  ;;  %v1300_v14 = vcombine.high %v1278_v55, %v1278_v55  ;;  %v1303_v5 = vcombine.high %v1299_v43, %v1299_v43 }
 0x396   : > { %v1327_v62 = vrot.slane %v1152_v54, %v2444_v11  ;;  %v1391_v52 = vrot.slane %v1250_v24, %v2444_v11  ;;  %v1254_v53 = vcombine.high %v1250_v24, %v1250_v24  ;;  %v1419_v4 = vrot.slane %v2468_v1, %v2444_v11 }
 0x397   : > { %v1371_v47 = vrot.slane %v1229_v8, %v2444_v11  ;;  %v1411_v10 = vrot.slane %v1300_v14, %v2444_v11  ;;  %v1156_v9 = vcombine.high %v1152_v54, %v1152_v54  ;;  %v1251_v63 = vcombine.high %v1229_v8, %v1229_v8  ;;  %v2810_v14 = vld [vmem:[#allocation10_spill] sm:$0xff] }
 0x398   : > { %1441 = vperm.xlu1 %1814, %v1315_v3   ;;  %v1399_v23 = vrot.slane %v1254_v53, %v2444_v11  ;;  %v1431_v3 = vrot.slane %v1303_v5, %v2444_v11  ;;  %v2809_v53 = vld [vmem:[#allocation11_spill] sm:$0xff] }
 0x399   : > { %1493 = vperm.xlu0 %1815, %v1367_v58   ;;  %v1335_v7 = vrot.slane %v1156_v9, %v2444_v11  ;;  %v1379_v58 = vrot.slane %v1251_v63, %v2444_v11 }
 0x39c   : > { %1449 = vperm.xlu1 %1814, %v1323_v22  }
 0x39d   : > { %1533 = vperm.xlu0 %1815, %v1407_v59  }
 0x3a0   : > { %1489 = vperm.xlu1 %1814, %v1363_v60  }
 0x3a1   : > { %1501 = vperm.xlu0 %1815, %v1375_v6  }
 0x3a4   : > { %1529 = vperm.xlu1 %1814, %v1403_v49  }
 0x3a5   : > { %1541 = vperm.xlu0 %1815, %v1415_v19  }
 0x3a8   : > { %1445 = vperm.xlu1 %1814, %v1319_v57  }
 0x3a9   : > { %1549 = vperm.xlu0 %1815, %v1423_v26  }
 0x3ac   : > { %1453 = vperm.xlu1 %1814, %v1327_v62  }
 0x3ad   : > { %1509 = vperm.xlu0 %1815, %v1383_v31  }
 0x3b0   : > { %1457 = vperm.xlu1 %1814, %v1331_v25   ;;  %v2808_v25 = vld [vmem:[#allocation8_spill] sm:$0xff] }
 0x3b1   : > { %1517 = vperm.xlu0 %1815, %v1391_v52  }
 0x3b4   : > { %1497 = vperm.xlu1 %1814, %v1371_v47  }
 0x3b5   : > { %1525 = vperm.xlu0 %1815, %v1399_v23  }
 0x3b8   : > { %1537 = vperm.xlu1 %1814, %v1411_v10   ;;  %v2811_v10 = vld [vmem:[#allocation26_spill] sm:$0xff] }
 0x3b9   : > { %1557 = vperm.xlu0 %1815, %v1431_v3  }
 0x3bc   : > { %1545 = vperm.xlu1 %1814, %v1419_v4   ;;  %v2812_v4 = vld [vmem:[#allocation25_spill] sm:$0xff] }
 0x3c0   : > { %1461 = vperm.xlu1 %1814, %v1335_v7   ;;  %v2813_v7 = vld [vmem:[#allocation3_spill] sm:$0xff] }
 0x3c4   : > { %1505 = vperm.xlu1 %1814, %v1379_v58  }
 0x3c8   : > { %1513 = vperm.xlu1 %1814, %v1387_v18  }
 0x3cc   : > { %1521 = vperm.xlu1 %1814, %v1395_v27  }
 0x3d0   : > { %1553 = vperm.xlu1 %1814, %v1427_v15   ;;  %v1835_v15 = vld [vmem:[%s1895_s23 + $0x8] sm:$0xff] }
 0x407   : > { %v1466_v1 = vpop.permute.xlu1 %1465 }
 0x408   : > { %v1576_v59 = vmul.f32 %v1832_v50, %v1466_v1  ;;  %v1577_v22 = vmul.f32 %v1833_v39, %v1466_v1  ;;  %v1434_v11 = vpop.permute.xlu0 %1433  ;;  %v2814_v1 = vld [vmem:[#allocation2_spill] sm:$0xff] }
 0x409   : > { %v1560_v18 = vmul.f32 %v1834_v38, %v1434_v11  ;;  %v1561_v27 = vmul.f32 %v1835_v15, %v1434_v11  ;;  %v2815_v39 = vld [vmem:[#allocation34_spill] sm:$0xff]  ;;  %v2816_v11 = vld [vmem:[#allocation33_spill] sm:$0xff] }
 0x40a   : > { %1640 = vst.msk [vmem:[%s2519_s25 + $0x80] sm:$0xff] %vm289_vm0, %v1576_v59  ;;  %1641 = vst.msk [vmem:[%s2519_s25 + $0x88] sm:$0xff] %vm289_vm0, %v1577_v22  ;;  %v2817_v15 = vld [vmem:[#allocation5_spill] sm:$0xff] }
 0x40b   : > { %1624 = vst.msk [vmem:[%s2519_s25] sm:$0xff] %vm289_vm0, %v1560_v18  ;;  %1625 = vst.msk [vmem:[%s2519_s25 + $0x8] sm:$0xff] %vm289_vm0, %v1561_v27  ;;  %v1474_v51 = vpop.permute.xlu1 %1473 }
 0x40c   : > { %v1580_v55 = vmul.f32 %v1474_v51, %v1939_v21  ;;  %v1581_v6 = vmul.f32 %v1474_v51, %v1936_v20  ;;  %v1470_v46 = vpop.permute.xlu0 %1469  ;;  %v2818_v51 = vld [vmem:[#allocation4_spill] sm:$0xff] }
 0x40d   : > { %v1578_v48 = vmul.f32 %v1470_v46, %v1919_v13  ;;  %v1579_v60 = vmul.f32 %v1470_v46, %v1916_v12  ;;  %v2819_v46 = vld [vmem:[#allocation24_spill] sm:$0xff] }
 0x40e   : > { %1644 = vst.msk [vmem:[%s2519_s25 + $0xa0] sm:$0xff] %vm289_vm0, %v1580_v55  ;;  %1645 = vst.msk [vmem:[%s2519_s25 + $0xa8] sm:$0xff] %vm289_vm0, %v1581_v6 }
 0x40f   : > { %1642 = vst.msk [vmem:[%s2519_s25 + $0x90] sm:$0xff] %vm289_vm0, %v1578_v48  ;;  %1643 = vst.msk [vmem:[%s2519_s25 + $0x98] sm:$0xff] %vm289_vm0, %v1579_v60  ;;  %v1482_v49 = vpop.permute.xlu1 %1481  ;;  %v2820_v60 = vld [vmem:[#allocation23_spill] sm:$0xff] }
 0x410   : > { %v1584_v21 = vmul.f32 %v1482_v49, %v1979_v37  ;;  %v1585_v20 = vmul.f32 %v1482_v49, %v1976_v36  ;;  %v1478_v19 = vpop.permute.xlu0 %1477 }
 0x411   : > { %v1582_v12 = vmul.f32 %v1478_v19, %v1959_v29  ;;  %v1583_v13 = vmul.f32 %v1478_v19, %v1956_v28 }
 0x412   : > { %1648 = vst.msk [vmem:[%s2519_s25 + $0xc0] sm:$0xff] %vm289_vm0, %v1584_v21  ;;  %1649 = vst.msk [vmem:[%s2519_s25 + $0xc8] sm:$0xff] %vm289_vm0, %v1585_v20  ;;  %v2821_v20 = vld [vmem:[#allocation14_spill] sm:$0xff] }
 0x413   : > { %1646 = vst.msk [vmem:[%s2519_s25 + $0xb0] sm:$0xff] %vm289_vm0, %v1582_v12  ;;  %1647 = vst.msk [vmem:[%s2519_s25 + $0xb8] sm:$0xff] %vm289_vm0, %v1583_v13  ;;  %v1438_v43 = vpop.permute.xlu1 %1437  ;;  %v2822_v12 = vld [vmem:[#allocation13_spill] sm:$0xff] }
 0x414   : > { %v1562_v37 = vmul.f32 %v1438_v43, %v1898_v0  ;;  %v1563_v36 = vmul.f32 %v1438_v43, %v1902_v2  ;;  %v1486_v56 = vpop.permute.xlu0 %1485 }
 0x415   : > { %v1586_v28 = vmul.f32 %v1486_v56, %v1999_v45  ;;  %v1587_v29 = vmul.f32 %v1486_v56, %v1996_v44  ;;  %v2824_v56 = vld [vmem:[#allocation31_spill] sm:$0xff] }
 0x416   : > { %1626 = vst.msk [vmem:[%s2519_s25 + $0x10] sm:$0xff] %vm289_vm0, %v1562_v37  ;;  %1627 = vst.msk [vmem:[%s2519_s25 + $0x18] sm:$0xff] %vm289_vm0, %v1563_v36  ;;  %v2823_v37 = vld [vmem:[#allocation32_spill] sm:$0xff] }
 0x417   : > { %1650 = vst.msk [vmem:[%s2519_s25 + $0xd0] sm:$0xff] %vm289_vm0, %v1586_v28  ;;  %1651 = vst.msk [vmem:[%s2519_s25 + $0xd8] sm:$0xff] %vm289_vm0, %v1587_v29  ;;  %v1442_v42 = vpop.permute.xlu1 %1441 }
 0x418   : > { %v1564_v0 = vmul.f32 %v1442_v42, %v1929_v17  ;;  %v1565_v2 = vmul.f32 %v1442_v42, %v1926_v16  ;;  %v1494_v26 = vpop.permute.xlu0 %1493  ;;  %v2825_v42 = vld [vmem:[#allocation7_spill] sm:$0xff] }
 0x419   : > { %v1590_v44 = vmul.f32 %v1494_v26, %v2099_v35  ;;  %v1591_v45 = vmul.f32 %v1494_v26, %v2096_v34  ;;  %v2804_v35 = vld [vmem:[#allocation12_spill] sm:$0xff] }
 0x41a   : > { %1628 = vst.msk [vmem:[%s2519_s25 + $0x20] sm:$0xff] %vm289_vm0, %v1564_v0  ;;  %1629 = vst.msk [vmem:[%s2519_s25 + $0x28] sm:$0xff] %vm289_vm0, %v1565_v2  ;;  %v2826_v2 = vld [vmem:[#allocation6_spill] sm:$0xff] }
 0x41b   : > { %1654 = vst.msk [vmem:[%s2519_s25 + $0xf0] sm:$0xff] %vm289_vm0, %v1590_v44  ;;  %1655 = vst.msk [vmem:[%s2519_s25 + $0xf8] sm:$0xff] %vm289_vm0, %v1591_v45  ;;  %v1450_v57 = vpop.permute.xlu1 %1449  ;;  %v2827_v45 = vld [vmem:[#allocation40_spill] sm:$0xff] }
 0x41c   : > { %v1568_v17 = vmul.f32 %v1450_v57, %v1969_v33  ;;  %v1569_v16 = vmul.f32 %v1450_v57, %v1966_v32  ;;  %v1534_v54 = vpop.permute.xlu0 %1533  ;;  %v2805_v33 = vld [vmem:[#allocation16_spill] sm:$0xff]  ;;  %v2806_v32 = vld [vmem:[#allocation15_spill] sm:$0xff] }
 0x41d   : > { %v1610_v34 = vmul.f32 %v1534_v54, %v2039_v61  ;;  %v1611_v40 = vmul.f32 %v1534_v54, %v2804_v35  ;;  %v2807_v61 = vld [vmem:[#allocation9_spill] sm:$0xff] }
 0x41e   : > { %1632 = vst.msk [vmem:[%s2519_s25 + $0x40] sm:$0xff] %vm289_vm0, %v1568_v17  ;;  %1633 = vst.msk [vmem:[%s2519_s25 + $0x48] sm:$0xff] %vm289_vm0, %v1569_v16  ;;  %v2828_v17 = vld [vmem:[#allocation39_spill] sm:$0xff] }
 0x41f   : > { %1674 = vst.msk [vmem:[%s2519_s25 + $0x190] sm:$0xff] %vm289_vm0, %v1610_v34  ;;  %1675 = vst.msk [vmem:[%s2519_s25 + $0x198] sm:$0xff] %vm289_vm0, %v1611_v40  ;;  %v1490_v41 = vpop.permute.xlu1 %1489  ;;  %v2829_v34 = vld [vmem:[#allocation20_spill] sm:$0xff]  ;;  %v2830_v40 = vld [vmem:[#allocation19_spill] sm:$0xff] }
 0x420   : > { %v1588_v62 = vmul.f32 %v1490_v41, %v2805_v33  ;;  %v1589_v30 = vmul.f32 %v1490_v41, %v2806_v32  ;;  %v1502_v31 = vpop.permute.xlu0 %1501 }
 0x421   : > { %v1594_v24 = vmul.f32 %v1502_v31, %v2807_v61  ;;  %v1595_v8 = vmul.f32 %v1502_v31, %v2808_v25 }
 0x422   : > { %1652 = vst.msk [vmem:[%s2519_s25 + $0xe0] sm:$0xff] %vm289_vm0, %v1588_v62  ;;  %1653 = vst.msk [vmem:[%s2519_s25 + $0xe8] sm:$0xff] %vm289_vm0, %v1589_v30  ;;  %v2831_v62 = vld [vmem:[#allocation42_spill] sm:$0xff]  ;;  %v2832_v30 = vld [vmem:[#allocation41_spill] sm:$0xff] }
 0x423   : > { %1658 = vst.msk [vmem:[%s2519_s25 + $0x110] sm:$0xff] %vm289_vm0, %v1594_v24  ;;  %1659 = vst.msk [vmem:[%s2519_s25 + $0x118] sm:$0xff] %vm289_vm0, %v1595_v8  ;;  %v1530_v52 = vpop.permute.xlu1 %1529  ;;  %v2833_v24 = vld [vmem:[#allocation30_spill] sm:$0xff]  ;;  %v2834_v8 = vld [vmem:[#allocation29_spill] sm:$0xff] }
 0x424   : > { %v1608_v47 = vmul.f32 %v1530_v52, %v2809_v53  ;;  %v1609_v23 = vmul.f32 %v1530_v52, %v2810_v14  ;;  %v1542_v5 = vpop.permute.xlu0 %1541 }
 0x425   : > { %v1614_v3 = vmul.f32 %v1542_v5, %v2811_v10  ;;  %v1615_v9 = vmul.f32 %v1542_v5, %v2812_v4 }
 0x426   : > { %1672 = vst.msk [vmem:[%s2519_s25 + $0x180] sm:$0xff] %vm289_vm0, %v1608_v47  ;;  %1673 = vst.msk [vmem:[%s2519_s25 + $0x188] sm:$0xff] %vm289_vm0, %v1609_v23  ;;  %v2835_v47 = vld [vmem:[#allocation22_spill] sm:$0xff]  ;;  %v2836_v23 = vld [vmem:[#allocation21_spill] sm:$0xff] }
 0x427   : > { %1678 = vst.msk [vmem:[%s2519_s25 + $0x1b0] sm:$0xff] %vm289_vm0, %v1614_v3  ;;  %1679 = vst.msk [vmem:[%s2519_s25 + $0x1b8] sm:$0xff] %vm289_vm0, %v1615_v9  ;;  %v1446_v63 = vpop.permute.xlu1 %1445  ;;  %v2837_v3 = vld [vmem:[#allocation18_spill] sm:$0xff]  ;;  %v2838_v9 = vld [vmem:[#allocation17_spill] sm:$0xff] }
 0x428   : > { %v1566_v58 = vmul.f32 %v1446_v63, %v2813_v7  ;;  %v1567_v50 = vmul.f32 %v1446_v63, %v2814_v1  ;;  %v1550_v59 = vpop.permute.xlu0 %1549 }
 0x429   : > { %v1618_v22 = vmul.f32 %v1550_v59, %v2815_v39  ;;  %v1619_v38 = vmul.f32 %v1550_v59, %v2816_v11 }
 0x42a   : > { %1630 = vst.msk [vmem:[%s2519_s25 + $0x30] sm:$0xff] %vm289_vm0, %v1566_v58  ;;  %1631 = vst.msk [vmem:[%s2519_s25 + $0x38] sm:$0xff] %vm289_vm0, %v1567_v50  ;;  %v2839_v58 = vld [vmem:[#allocation28_spill] sm:$0xff]  ;;  %v2840_v50 = vld [vmem:[#allocation27_spill] sm:$0xff] }
 0x42b   : > { %1682 = vst.msk [vmem:[%s2519_s25 + $0x1d0] sm:$0xff] %vm289_vm0, %v1618_v22  ;;  %1683 = vst.msk [vmem:[%s2519_s25 + $0x1d8] sm:$0xff] %vm289_vm0, %v1619_v38  ;;  %v1454_v18 = vpop.permute.xlu1 %1453  ;;  %v2841_v22 = vld [vmem:[#allocation36_spill] sm:$0xff]  ;;  %v2842_v38 = vld [vmem:[#allocation35_spill] sm:$0xff] }
 0x42c   : > { %v1570_v27 = vmul.f32 %v1454_v18, %v2817_v15  ;;  %v1571_v55 = vmul.f32 %v1454_v18, %v2818_v51  ;;  %v1510_v6 = vpop.permute.xlu0 %1509 }
 0x42d   : > { %v1598_v48 = vmul.f32 %v1510_v6, %v2819_v46  ;;  %v1599_v49 = vmul.f32 %v1510_v6, %v2820_v60 }
 0x42e   : > { %1634 = vst.msk [vmem:[%s2519_s25 + $0x50] sm:$0xff] %vm289_vm0, %v1570_v27  ;;  %1635 = vst.msk [vmem:[%s2519_s25 + $0x58] sm:$0xff] %vm289_vm0, %v1571_v55  ;;  %v2843_v27 = vld [vmem:[#allocation38_spill] sm:$0xff]  ;;  %v2844_v55 = vld [vmem:[#allocation37_spill] sm:$0xff] }
 0x42f   : > { %1662 = vst.msk [vmem:[%s2519_s25 + $0x130] sm:$0xff] %vm289_vm0, %v1598_v48  ;;  %1663 = vst.msk [vmem:[%s2519_s25 + $0x138] sm:$0xff] %vm289_vm0, %v1599_v49  ;;  %v1458_v21 = vpop.permute.xlu1 %1457 }
 0x430   : > { %v1572_v19 = vmul.f32 %v1458_v21, %v2821_v20  ;;  %v1573_v13 = vmul.f32 %v1458_v21, %v2822_v12  ;;  %v1518_v43 = vpop.permute.xlu0 %1517 }
 0x431   : > { %v1602_v36 = vmul.f32 %v1518_v43, %v2823_v37  ;;  %v1603_v28 = vmul.f32 %v1518_v43, %v2824_v56 }
 0x432   : > { %1636 = vst.msk [vmem:[%s2519_s25 + $0x60] sm:$0xff] %vm289_vm0, %v1572_v19  ;;  %1637 = vst.msk [vmem:[%s2519_s25 + $0x68] sm:$0xff] %vm289_vm0, %v1573_v13 }
 0x433   : > { %1666 = vst.msk [vmem:[%s2519_s25 + $0x150] sm:$0xff] %vm289_vm0, %v1602_v36  ;;  %1667 = vst.msk [vmem:[%s2519_s25 + $0x158] sm:$0xff] %vm289_vm0, %v1603_v28  ;;  %v1498_v29 = vpop.permute.xlu1 %1497 }
 0x434   : > { %v1592_v0 = vmul.f32 %v1498_v29, %v2825_v42  ;;  %v1593_v26 = vmul.f32 %v1498_v29, %v2826_v2  ;;  %v1526_v44 = vpop.permute.xlu0 %1525 }
 0x435   : > { %v1606_v57 = vmul.f32 %v1526_v44, %v2827_v45  ;;  %v1607_v16 = vmul.f32 %v1526_v44, %v2828_v17 }
 0x436   : > { %1656 = vst.msk [vmem:[%s2519_s25 + $0x100] sm:$0xff] %vm289_vm0, %v1592_v0  ;;  %1657 = vst.msk [vmem:[%s2519_s25 + $0x108] sm:$0xff] %vm289_vm0, %v1593_v26 }
 0x437   : > { %1670 = vst.msk [vmem:[%s2519_s25 + $0x170] sm:$0xff] %vm289_vm0, %v1606_v57  ;;  %1671 = vst.msk [vmem:[%s2519_s25 + $0x178] sm:$0xff] %vm289_vm0, %v1607_v16  ;;  %v1538_v54 = vpop.permute.xlu1 %1537 }
 0x438   : > { %v1612_v35 = vmul.f32 %v1538_v54, %v2829_v34  ;;  %v1613_v41 = vmul.f32 %v1538_v54, %v2830_v40  ;;  %v1558_v33 = vpop.permute.xlu0 %1557 }
 0x439   : > { %v1622_v32 = vmul.f32 %v1558_v33, %v2831_v62  ;;  %v1623_v31 = vmul.f32 %v1558_v33, %v2832_v30 }
 0x43a   : > { %1676 = vst.msk [vmem:[%s2519_s25 + $0x1a0] sm:$0xff] %vm289_vm0, %v1612_v35  ;;  %1677 = vst.msk [vmem:[%s2519_s25 + $0x1a8] sm:$0xff] %vm289_vm0, %v1613_v41 }
 0x43b   : > { %1686 = vst.msk [vmem:[%s2519_s25 + $0x1f0] sm:$0xff] %vm289_vm0, %v1622_v32  ;;  %1687 = vst.msk [vmem:[%s2519_s25 + $0x1f8] sm:$0xff] %vm289_vm0, %v1623_v31  ;;  %v1546_v61 = vpop.permute.xlu1 %1545 }
 0x43c   : > { %v1616_v25 = vmul.f32 %v1546_v61, %v2833_v24  ;;  %v1617_v52 = vmul.f32 %v1546_v61, %v2834_v8 }
 0x43e   : > { %1680 = vst.msk [vmem:[%s2519_s25 + $0x1c0] sm:$0xff] %vm289_vm0, %v1616_v25  ;;  %1681 = vst.msk [vmem:[%s2519_s25 + $0x1c8] sm:$0xff] %vm289_vm0, %v1617_v52 }
 0x43f   : > { %v1462_v53 = vpop.permute.xlu1 %1461 }
 0x440   : > { %v1574_v14 = vmul.f32 %v1462_v53, %v2835_v47  ;;  %v1575_v5 = vmul.f32 %v1462_v53, %v2836_v23 }
 0x442   : > { %1638 = vst.msk [vmem:[%s2519_s25 + $0x70] sm:$0xff] %vm289_vm0, %v1574_v14  ;;  %1639 = vst.msk [vmem:[%s2519_s25 + $0x78] sm:$0xff] %vm289_vm0, %v1575_v5 }
 0x443   : > { %v1506_v10 = vpop.permute.xlu1 %1505 }
 0x444   : > { %v1596_v4 = vmul.f32 %v1506_v10, %v2837_v3  ;;  %v1597_v63 = vmul.f32 %v1506_v10, %v2838_v9 }
 0x446   : > { %1660 = vst.msk [vmem:[%s2519_s25 + $0x120] sm:$0xff] %vm289_vm0, %v1596_v4  ;;  %1661 = vst.msk [vmem:[%s2519_s25 + $0x128] sm:$0xff] %vm289_vm0, %v1597_v63 }
 0x447   : > { %v1514_v7 = vpop.permute.xlu1 %1513 }
 0x448   : > { %v1600_v1 = vmul.f32 %v1514_v7, %v2839_v58  ;;  %v1601_v59 = vmul.f32 %v1514_v7, %v2840_v50 }
 0x44a   : > { %1664 = vst.msk [vmem:[%s2519_s25 + $0x140] sm:$0xff] %vm289_vm0, %v1600_v1  ;;  %1665 = vst.msk [vmem:[%s2519_s25 + $0x148] sm:$0xff] %vm289_vm0, %v1601_v59 }
 0x44b   : > { %v1522_v39 = vpop.permute.xlu1 %1521 }
 0x44c   : > { %v1604_v11 = vmul.f32 %v1522_v39, %v2841_v22  ;;  %v1605_v18 = vmul.f32 %v1522_v39, %v2842_v38 }
 0x44e   : > { %1668 = vst.msk [vmem:[%s2519_s25 + $0x160] sm:$0xff] %vm289_vm0, %v1604_v11  ;;  %1669 = vst.msk [vmem:[%s2519_s25 + $0x168] sm:$0xff] %vm289_vm0, %v1605_v18 }
 0x44f   : > { %v1554_v15 = vpop.permute.xlu1 %1553 }
 0x450   : > { %v1620_v51 = vmul.f32 %v1554_v15, %v2843_v27  ;;  %v1621_v6 = vmul.f32 %v1554_v15, %v2844_v55 }
 0x452   : > { %1684 = vst.msk [vmem:[%s2519_s25 + $0x1e0] sm:$0xff] %vm289_vm0, %v1620_v51  ;;  %1685 = vst.msk [vmem:[%s2519_s25 + $0x1e8] sm:$0xff] %vm289_vm0, %v1621_v6 }
 0x453 PF: > { %s15_s18 = sadd.s32 1, %s1842_s18  }
 0x454   : > { %p12_p4 = scmp.ge.s32.totalorder %s15_s18, 4  }
 0x456   :  { %14 = sbr.rel (!%p12_p4) target bundleno = 1 (0x1), region = 70 }

</bundles_post_ra>
